<compile_context>
chip_gen: v6e
topology: v6e:2x2x1
jax: 0.10.0
libtpu: 0.0.40
codegen_flags: <defaults>
</compile_context>

<pallas_src>
import jax
import jax.numpy as jnp
from jax import lax
from jax.experimental import pallas as pl
from jax.experimental.pallas import tpu as pltpu


def _round_up(x, m):
    return ((x + m - 1) // m) * m


# ---------------------------------------------------------------------------
# Pallas kernel
# ---------------------------------------------------------------------------
def _complex_conv_kernel(xr_ref, xi_ref, wr_ref, wi_ref, ws_ref,
                         breal_ref, bimag_ref, or_ref, oi_ref):
    """One (M-tile, K-tile) step of the complex conv expressed as a GEMM.

    xr, xi        : (TM, TK)  real / imag im2col patch tiles
    wr, wi, ws    : (TK, OC)  real / imag / (real+imag) flattened weights
    breal, bimag  : (1,  OC)  combined biases (br - bi) and (br + bi)
    or, oi        : (TM, OC)  output accumulators, resident across the K axis
    """
    k = pl.program_id(1)

    # The output blocks revisit the same tile for every k (reduction axis),
    # so they act as f32 accumulators.  Initialise them with the (already
    # combined) biases on the first K step.
    @pl.when(k == 0)
    def _init():
        or_ref[...] = jnp.broadcast_to(breal_ref[...], or_ref.shape)
        oi_ref[...] = jnp.broadcast_to(bimag_ref[...], oi_ref.shape)

    xr = xr_ref[...]
    xi = xi_ref[...]

    # Gauss / Karatsuba: 3 matmuls instead of 4 (25% fewer MXU FLOPs).
    t1 = jnp.dot(xr, wr_ref[...], preferred_element_type=jnp.float32)
    t2 = jnp.dot(xi, wi_ref[...], preferred_element_type=jnp.float32)
    t3 = jnp.dot(xr + xi, ws_ref[...], preferred_element_type=jnp.float32)

    or_ref[...] += t1 - t2            # rconv(xr) - iconv(xi)
    oi_ref[...] += t3 - t1 - t2       # rconv(xi) + iconv(xr)


# ---------------------------------------------------------------------------
# Wrapper-side helpers
# ---------------------------------------------------------------------------
def _im2col(x, kh, kw, stride, padding, dilation):
    """x: (B, C, H, W) -> patches (B*OH*OW, C*KH*KW), plus (OH, OW).

    K ordering is c-major, (kh, kw)-minor, matching an OIHW weight flatten.
    """
    if padding > 0:
        x = jnp.pad(x, ((0, 0), (0, 0), (padding, padding), (padding, padding)))
    B, C, H, W = x.shape
    oh = (H - (dilation * (kh - 1) + 1)) // stride + 1
    ow = (W - (dilation * (kw - 1) + 1)) // stride + 1
    cols = []
    for i in range(kh):
        for j in range(kw):
            hs = i * dilation
            ws = j * dilation
            patch = x[:, :,
                      hs:hs + stride * (oh - 1) + 1:stride,
                      ws:ws + stride * (ow - 1) + 1:stride]  # (B, C, oh, ow)
            cols.append(patch)
    col = jnp.stack(cols, axis=2)                 # (B, C, KH*KW, oh, ow)
    col = col.reshape(B, C * kh * kw, oh, ow)     # c-major, tap-minor
    patches = col.transpose(0, 2, 3, 1).reshape(B * oh * ow, C * kh * kw)
    return patches, oh, ow


def _choose_tiles(M, K, OC, elem_bytes):
    """Pick (TM, M_pad, TK, K_pad) from a conservative VMEM budget.

    Budget is sized so double-buffered tiles + resident weights stay well
    under v7x's 64 MiB per-core VMEM (and trivially under v5e/v6e's 128 MiB).
    """
    # K tiling: single full-K block when modest (full-dim blocks are exempt
    # from the 128-divisibility rule); otherwise 512-wide K tiles.
    if K <= 2048:
        tk, k_pad = K, K
    else:
        tk = 512
        k_pad = _round_up(K, tk)

    budget = 24 * 1024 * 1024
    w_bytes = 3 * 2 * tk * OC * elem_bytes                # 3 weight blocks (x2 safety)
    per_row = 2 * 2 * tk * elem_bytes + 2 * 2 * OC * 4    # xr/xi tiles + 2 f32 out tiles (x2 buffers)
    tm = (budget - w_bytes) // max(per_row, 1)
    tm = max(8, min(int(tm), 2048, _round_up(M, 8)))
    tm = max(8, (tm // 8) * 8)                            # sublane multiple
    m_pad = _round_up(M, tm)
    return tm, m_pad, tk, k_pad


# ---------------------------------------------------------------------------
# Module
# ---------------------------------------------------------------------------
class ComplexConv2d:
    """JAX/Pallas equivalent of the PyTorch ComplexConv2d module."""

    def __init__(self, in_channels, out_channels, kernel_size=3, stride=1,
                 padding=0, dilation=1, groups=1, bias=True, *, key,
                 compute_dtype=jnp.float32):
        assert groups == 1  # TODO(synk): grouped convolution not implemented
        self.in_channels = in_channels
        self.out_channels = out_channels
        self.kh = self.kw = kernel_size
        self.stride = stride
        self.padding = padding
        self.dilation = dilation
        self.use_bias = bias
        # bf16 recommended on v6e/v7x for MXU throughput; f32 default keeps
        # the tight numerical tolerance of the reference check.
        self.compute_dtype = compute_dtype

        k1, k2, k3, k4 = jax.random.split(key, 4)
        fan_in = in_channels * self.kh * self.kw
        bound = 1.0 / jnp.sqrt(fan_in)
        wshape = (out_channels, in_channels, self.kh, self.kw)  # OIHW
        self.wr = jax.random.uniform(k1, wshape, jnp.float32, -bound, bound)
        self.wi = jax.random.uniform(k2, wshape, jnp.float32, -bound, bound)
        if bias:
            self.br = jax.random.uniform(k3, (out_channels,), jnp.float32,
                                         -bound, bound)
            self.bi = jax.random.uniform(k4, (out_channels,), jnp.float32,
                                         -bound, bound)
        else:
            self.br = jnp.zeros((out_channels,), jnp.float32)
            self.bi = jnp.zeros((out_channels,), jnp.float32)

    def __call__(self, x):
        # x: complex64, NCHW
        B = x.shape[0]
        OC = self.out_channels
        cdt = self.compute_dtype

        xr = jnp.real(x).astype(jnp.float32)
        xi = jnp.imag(x).astype(jnp.float32)

        pr, oh, ow = _im2col(xr, self.kh, self.kw, self.stride, self.padding,
                             self.dilation)
        pi, _, _ = _im2col(xi, self.kh, self.kw, self.stride, self.padding,
                           self.dilation)

        K = self.in_channels * self.kh * self.kw
        M = pr.shape[0]
        elem_bytes = jnp.dtype(cdt).itemsize
        TM, M_pad, TK, K_pad = _choose_tiles(M, K, OC, elem_bytes)

        # Flattened weights (K, OC); Gauss sum precomputed once in f32.
        wr2 = self.wr.reshape(OC, K).T.astype(cdt)
        wi2 = self.wi.reshape(OC, K).T.astype(cdt)
        ws2 = (self.wr + self.wi).reshape(OC, K).T.astype(cdt)

        # Hoisted bias combinations (real/imag parts of the output bias).
        b_real = (self.br - self.bi).reshape(1, OC).astype(jnp.float32)
        b_imag = (self.br + self.bi).reshape(1, OC).astype(jnp.float32)

        # Zero-pad M / K so every block tiles exactly (zeros are inert in the
        # matmul; padded output rows are sliced away below).
        if K_pad != K:
            pr = jnp.pad(pr, ((0, 0), (0, K_pad - K)))
            pi = jnp.pad(pi, ((0, 0), (0, K_pad - K)))
            wr2 = jnp.pad(wr2, ((0, K_pad - K), (0, 0)))
            wi2 = jnp.pad(wi2, ((0, K_pad - K), (0, 0)))
            ws2 = jnp.pad(ws2, ((0, K_pad - K), (0, 0)))
        if M_pad != M:
            pr = jnp.pad(pr, ((0, M_pad - M), (0, 0)))
            pi = jnp.pad(pi, ((0, M_pad - M), (0, 0)))
        pr = pr.astype(cdt)
        pi = pi.astype(cdt)

        nm = M_pad // TM
        nk = K_pad // TK

        out_r, out_i = pl.pallas_call(
            _complex_conv_kernel,
            out_shape=(jax.ShapeDtypeStruct((M_pad, OC), jnp.float32),
                       jax.ShapeDtypeStruct((M_pad, OC), jnp.float32)),
            grid_spec=pltpu.PrefetchScalarGridSpec(
                num_scalar_prefetch=0,
                grid=(nm, nk),
                in_specs=[
                    pl.BlockSpec((TM, TK), lambda i, k: (i, k)),   # xr patches
                    pl.BlockSpec((TM, TK), lambda i, k: (i, k)),   # xi patches
                    pl.BlockSpec((TK, OC), lambda i, k: (k, 0)),   # wr
                    pl.BlockSpec((TK, OC), lambda i, k: (k, 0)),   # wi
                    pl.BlockSpec((TK, OC), lambda i, k: (k, 0)),   # wr + wi
                    pl.BlockSpec((1, OC), lambda i, k: (0, 0)),    # br - bi
                    pl.BlockSpec((1, OC), lambda i, k: (0, 0)),    # br + bi
                ],
                out_specs=(
                    pl.BlockSpec((TM, OC), lambda i, k: (i, 0)),
                    pl.BlockSpec((TM, OC), lambda i, k: (i, 0)),
                ),
            ),
            compiler_params=pltpu.CompilerParams(
                dimension_semantics=("parallel", "arbitrary"),
                vmem_limit_bytes=48 * 1024 * 1024,
            ),
        )(pr, pi, wr2, wi2, ws2, b_real, b_imag)

        # (M, OC) -> (B, OH, OW, OC) -> NCHW (match the PyTorch module).
        out_r = out_r[:M].reshape(B, oh, ow, OC).transpose(0, 3, 1, 2)
        out_i = out_i[:M].reshape(B, oh, ow, OC).transpose(0, 3, 1, 2)
        return lax.complex(out_r, out_i)


# ---------------------------------------------------------------------------
# Reference + test
# ---------------------------------------------------------------------------
def _reference(x, conv):
    """Pure-JAX reference using lax.conv_general_dilated (NCHW / OIHW)."""
    def real_conv(z, w, b):
        y = lax.conv_general_dilated(
            z, w,
            window_strides=(conv.stride, conv.stride),
            padding=[(conv.padding, conv.padding)] * 2,
            rhs_dilation=(conv.dilation, conv.dilation),
            dimension_numbers=('NCHW', 'OIHW', 'NCHW'))
        return y + b[None, :, None, None]

    xr = jnp.real(x).astype(jnp.float32)
    xi = jnp.imag(x).astype(jnp.float32)
    rconv = lambda z: real_conv(z, conv.wr, conv.br)
    iconv = lambda z: real_conv(z, conv.wi, conv.bi)
    return lax.complex(rconv(xr) - iconv(xi), rconv(xi) + iconv(xr))


if __name__ == "__main__":
    key = jax.random.PRNGKey(0)
    kp, kr, ki = jax.random.split(key, 3)

    B, C, H, W = 2, 4, 16, 16
    OC = 8

    xr = jax.random.normal(kr, (B, C, H, W), jnp.float32)
    xi = jax.random.normal(ki, (B, C, H, W), jnp.float32)
    x = lax.complex(xr, xi)  # complex64, NCHW

    conv = ComplexConv2d(C, OC, kernel_size=3, stride=1, padding=0,
                         dilation=1, groups=1, bias=True, key=kp)

    out = conv(x)
    out = jax.block_until_ready(out)

    ref = _reference(x, conv)
    assert out.shape == ref.shape == (B, OC, H - 2, W - 2)
    assert out.dtype == jnp.complex64
    if not (jnp.allclose(jnp.real(out), jnp.real(ref), atol=1e-4, rtol=1e-4)
            and jnp.allclose(jnp.imag(out), jnp.imag(ref), atol=1e-4, rtol=1e-4)):
        raise SystemExit("mismatch vs reference")

    print("KERNEL_OK")
</pallas_src>

<mosaic_0001>
module attributes {stable_mosaic.version = 11 : i64} {
  func.func @_complex_conv_kernel(%arg0: i32, %arg1: i32, %arg2: memref<392x36xf32, #tpu.memory_space<vmem>>, %arg3: memref<392x36xf32, #tpu.memory_space<vmem>>, %arg4: memref<36x8xf32, #tpu.memory_space<vmem>>, %arg5: memref<36x8xf32, #tpu.memory_space<vmem>>, %arg6: memref<36x8xf32, #tpu.memory_space<vmem>>, %arg7: memref<1x8xf32, #tpu.memory_space<vmem>>, %arg8: memref<1x8xf32, #tpu.memory_space<vmem>>, %arg9: memref<392x8xf32, #tpu.memory_space<vmem>>, %arg10: memref<392x8xf32, #tpu.memory_space<vmem>>) attributes {dimension_semantics = [#tpu.dimension_semantics<parallel>, #tpu.dimension_semantics<arbitrary>], iteration_bounds = array<i64: 1, 1>, scalar_prefetch = 0 : i64, scratch_operands = 0 : i64, tpu.core_type = #tpu.core_type<tc>, window_params = [{transform_indices = @transform_0, window_bounds = array<i64: 392, 36>}, {transform_indices = @transform_1, window_bounds = array<i64: 392, 36>}, {transform_indices = @transform_2, window_bounds = array<i64: 36, 8>}, {transform_indices = @transform_3, window_bounds = array<i64: 36, 8>}, {transform_indices = @transform_4, window_bounds = array<i64: 36, 8>}, {pipeline_mode = #tpu.pipeline_mode<synchronous>, transform_indices = @transform_5, window_bounds = array<i64: 1, 8>}, {pipeline_mode = #tpu.pipeline_mode<synchronous>, transform_indices = @transform_6, window_bounds = array<i64: 1, 8>}, {transform_indices = @transform_7, window_bounds = array<i64: 392, 8>}, {transform_indices = @transform_8, window_bounds = array<i64: 392, 8>}]} {
    %c0_i32 = arith.constant 0 : i32
    %0 = arith.cmpi eq, %arg1, %c0_i32 : i32
    %1 = arith.extui %0 : i1 to i32
    %c0_i32_0 = arith.constant 0 : i32
    %2 = arith.cmpi ne, %1, %c0_i32_0 : i32
    scf.if %2 {
      %c0_20 = arith.constant 0 : index
      %c0_21 = arith.constant 0 : index
      %21 = vector.load %arg7[%c0_20, %c0_21] : memref<1x8xf32, #tpu.memory_space<vmem>>, vector<1x8xf32>
      %22 = vector.shape_cast %21 : vector<1x8xf32> to vector<1x8xf32>
      %23 = vector.broadcast %22 : vector<1x8xf32> to vector<392x8xf32>
      %c0_22 = arith.constant 0 : index
      %c0_23 = arith.constant 0 : index
      %24 = vector.load %arg9[%c0_22, %c0_23] : memref<392x8xf32, #tpu.memory_space<vmem>>, vector<392x8xf32>
      tpu.vector_store %arg9[%c0_22, %c0_23], %23 {strides = array<i32>} : memref<392x8xf32, #tpu.memory_space<vmem>>, vector<392x8xf32>,
      %c0_24 = arith.constant 0 : index
      %c0_25 = arith.constant 0 : index
      %25 = vector.load %arg8[%c0_24, %c0_25] : memref<1x8xf32, #tpu.memory_space<vmem>>, vector<1x8xf32>
      %26 = vector.shape_cast %25 : vector<1x8xf32> to vector<1x8xf32>
      %27 = vector.broadcast %26 : vector<1x8xf32> to vector<392x8xf32>
      %c0_26 = arith.constant 0 : index
      %c0_27 = arith.constant 0 : index
      %28 = vector.load %arg10[%c0_26, %c0_27] : memref<392x8xf32, #tpu.memory_space<vmem>>, vector<392x8xf32>
      tpu.vector_store %arg10[%c0_26, %c0_27], %27 {strides = array<i32>} : memref<392x8xf32, #tpu.memory_space<vmem>>, vector<392x8xf32>,
    } else {
    }
    %c0 = arith.constant 0 : index
    %c0_1 = arith.constant 0 : index
    %3 = vector.load %arg2[%c0, %c0_1] : memref<392x36xf32, #tpu.memory_space<vmem>>, vector<392x36xf32>
    %c0_2 = arith.constant 0 : index
    %c0_3 = arith.constant 0 : index
    %4 = vector.load %arg3[%c0_2, %c0_3] : memref<392x36xf32, #tpu.memory_space<vmem>>, vector<392x36xf32>
    %c0_4 = arith.constant 0 : index
    %c0_5 = arith.constant 0 : index
    %5 = vector.load %arg4[%c0_4, %c0_5] : memref<36x8xf32, #tpu.memory_space<vmem>>, vector<36x8xf32>
    %cst = arith.constant dense<0.000000e+00> : vector<392x8xf32>
    %6 = tpu.matmul %3, %5, %cst {dimension_numbers = #tpu.dot_dimension_numbers<[1], [0], [0], [1], [0, 0, 1, 1], [], []>} : vector<392x36xf32>, vector<36x8xf32>, vector<392x8xf32> -> vector<392x8xf32>
    %c0_6 = arith.constant 0 : index
    %c0_7 = arith.constant 0 : index
    %7 = vector.load %arg5[%c0_6, %c0_7] : memref<36x8xf32, #tpu.memory_space<vmem>>, vector<36x8xf32>
    %cst_8 = arith.constant dense<0.000000e+00> : vector<392x8xf32>
    %8 = tpu.matmul %4, %7, %cst_8 {dimension_numbers = #tpu.dot_dimension_numbers<[1], [0], [0], [1], [0, 0, 1, 1], [], []>} : vector<392x36xf32>, vector<36x8xf32>, vector<392x8xf32> -> vector<392x8xf32>
    %9 = arith.addf %3, %4 : vector<392x36xf32>
    %c0_9 = arith.constant 0 : index
    %c0_10 = arith.constant 0 : index
    %10 = vector.load %arg6[%c0_9, %c0_10] : memref<36x8xf32, #tpu.memory_space<vmem>>, vector<36x8xf32>
    %cst_11 = arith.constant dense<0.000000e+00> : vector<392x8xf32>
    %11 = tpu.matmul %9, %10, %cst_11 {dimension_numbers = #tpu.dot_dimension_numbers<[1], [0], [0], [1], [0, 0, 1, 1], [], []>} : vector<392x36xf32>, vector<36x8xf32>, vector<392x8xf32> -> vector<392x8xf32>
    %c0_12 = arith.constant 0 : index
    %c0_13 = arith.constant 0 : index
    %12 = vector.load %arg9[%c0_12, %c0_13] : memref<392x8xf32, #tpu.memory_space<vmem>>, vector<392x8xf32>
    %13 = arith.subf %6, %8 : vector<392x8xf32>
    %14 = arith.addf %12, %13 : vector<392x8xf32>
    %c0_14 = arith.constant 0 : index
    %c0_15 = arith.constant 0 : index
    %15 = vector.load %arg9[%c0_14, %c0_15] : memref<392x8xf32, #tpu.memory_space<vmem>>, vector<392x8xf32>
    tpu.vector_store %arg9[%c0_14, %c0_15], %14 {strides = array<i32>} : memref<392x8xf32, #tpu.memory_space<vmem>>, vector<392x8xf32>,
    %c0_16 = arith.constant 0 : index
    %c0_17 = arith.constant 0 : index
    %16 = vector.load %arg10[%c0_16, %c0_17] : memref<392x8xf32, #tpu.memory_space<vmem>>, vector<392x8xf32>
    %17 = arith.subf %11, %6 : vector<392x8xf32>
    %18 = arith.subf %17, %8 : vector<392x8xf32>
    %19 = arith.addf %16, %18 : vector<392x8xf32>
    %c0_18 = arith.constant 0 : index
    %c0_19 = arith.constant 0 : index
    %20 = vector.load %arg10[%c0_18, %c0_19] : memref<392x8xf32, #tpu.memory_space<vmem>>, vector<392x8xf32>
    tpu.vector_store %arg10[%c0_18, %c0_19], %19 {strides = array<i32>} : memref<392x8xf32, #tpu.memory_space<vmem>>, vector<392x8xf32>,
    return
  }
  func.func @transform_0(%arg0: i32, %arg1: i32) -> (i32, i32) {
    %c0_i32 = arith.constant 0 : i32
    return %arg0, %arg1 : i32, i32
  }
  func.func @transform_1(%arg0: i32, %arg1: i32) -> (i32, i32) {
    %c0_i32 = arith.constant 0 : i32
    return %arg0, %arg1 : i32, i32
  }
  func.func @transform_2(%arg0: i32, %arg1: i32) -> (i32, i32) {
    %c0_i32 = arith.constant 0 : i32
    %c0_i32_0 = arith.constant 0 : i32
    return %arg1, %c0_i32 : i32, i32
  }
  func.func @transform_3(%arg0: i32, %arg1: i32) -> (i32, i32) {
    %c0_i32 = arith.constant 0 : i32
    %c0_i32_0 = arith.constant 0 : i32
    return %arg1, %c0_i32 : i32, i32
  }
  func.func @transform_4(%arg0: i32, %arg1: i32) -> (i32, i32) {
    %c0_i32 = arith.constant 0 : i32
    %c0_i32_0 = arith.constant 0 : i32
    return %arg1, %c0_i32 : i32, i32
  }
  func.func @transform_5(%arg0: i32, %arg1: i32) -> (i32, i32) {
    %c0_i32 = arith.constant 0 : i32
    %c0_i32_0 = arith.constant 0 : i32
    %c0_i32_1 = arith.constant 0 : i32
    return %c0_i32, %c0_i32_0 : i32, i32
  }
  func.func @transform_6(%arg0: i32, %arg1: i32) -> (i32, i32) {
    %c0_i32 = arith.constant 0 : i32
    %c0_i32_0 = arith.constant 0 : i32
    %c0_i32_1 = arith.constant 0 : i32
    return %c0_i32, %c0_i32_0 : i32, i32
  }
  func.func @transform_7(%arg0: i32, %arg1: i32) -> (i32, i32) {
    %c0_i32 = arith.constant 0 : i32
    %c0_i32_0 = arith.constant 0 : i32
    return %arg0, %c0_i32 : i32, i32
  }
  func.func @transform_8(%arg0: i32, %arg1: i32) -> (i32, i32) {
    %c0_i32 = arith.constant 0 : i32
    %c0_i32_0 = arith.constant 0 : i32
    return %arg0, %c0_i32 : i32, i32
  }
}

</mosaic_0001>

<bundles_post_ra>
// kernel: tpu_custom_call.1
= control target key start
LH: loop header
LB: loop body
LE: loop exit
PB: predicated region body
PF: predicated region fallthrough
CT: control target
= control target key end

     0   :  { %vm396_vm0 = vcmask 1043456   ;;  %v2936_v0 = vmov 0.0   ;;  %vm248_vm1 = vcmask 293888   ;;  %vm2937_vm2 = vmmov 0   ;;  %s5263_s2 = inlined_call_operand.vmem [shape: f32[36,8], index: 2, kind: input, shape index: {}]   ;;  %s5264_s0 = inlined_call_operand.vmem [shape: f32[392,36], index: 0, kind: input, shape index: {}]   ;;  %s5265_s4 = inlined_call_operand.vmem [shape: f32[36,8], index: 4, kind: input, shape index: {}]   ;;  %s5266_s3 = inlined_call_operand.vmem [shape: f32[36,8], index: 3, kind: input, shape index: {}]   ;;  %s5267_s1 = inlined_call_operand.vmem [shape: f32[392,36], index: 1, kind: input, shape index: {}]   ;;  %s5268_s5 = inlined_call_operand.vmem [shape: f32[1,8], index: 5, kind: input, shape index: {}]   ;;  %s5269_s7 = inlined_call_operand.vmem [shape: f32[392,8], index: 7, kind: output, shape index: {0}]   ;;  %s5270_s6 = inlined_call_operand.vmem [shape: f32[1,8], index: 6, kind: input, shape index: {}]   ;;  %s5271_s8 = inlined_call_operand.vmem [shape: f32[392,8], index: 8, kind: output, shape index: {1}]  }
   0x1   :  { %2453 = vmatprep.subr.mxu0 %v2936_v0  ;;  %2924 = vmatprep.subr.mxu1 %v2936_v0  ;;  %v247_v1 = vld [vmem:[%s5263_s2 + $0x20] sm:$0xf]  ;;  %v246_v2 = vld [vmem:[%s5263_s2 + $0x18] sm:$0xff]  ;;  %v245_v3 = vld [vmem:[%s5263_s2 + $0x10] sm:$0xff]  ;;  %vm39_vm3 = vcmask 64512  }
   0x2   :  { %2454 = vmatpush3.msk.msra.mxu0 %vm396_vm0, %v247_v1  ;;  %2929 = vmatpush3.msk.msra.mxu1 %vm396_vm0, %v247_v1  ;;  %v244_v4 = vld [vmem:[%s5263_s2 + $0x8] sm:$0xff]  ;;  %v243_v5 = vld [vmem:[%s5263_s2] sm:$0xff]  ;;  %v3042_v10 = vld [vmem:[%s5264_s0 + $0xd0] sm:$0xff] }
   0x3   :  { %2455 = vmatprep.subr.mxu0 %v2936_v0  ;;  %2925 = vmatprep.subr.mxu1 %v2936_v0  ;;  %v3013_v6 = vld [vmem:[%s5264_s0] sm:$0xff]  ;;  %v3018_v7 = vld [vmem:[%s5264_s0 + $0xc8] sm:$0xff]  ;;  %v1227_v12 = vld [vmem:[%s5265_s4 + $0x18] sm:$0xff] }
   0x4   :  { %2456 = vmatpush3.msra.mxu0 %v246_v2  ;;  %2930 = vmatpush3.msra.mxu1 %v246_v2  ;;  %v1228_v8 = vld [vmem:[%s5265_s4 + $0x20] sm:$0xf]  ;;  %v3037_v9 = vld [vmem:[%s5264_s0 + $0x8] sm:$0xff]  ;;  %v3066_v13 = vld [vmem:[%s5264_s0 + $0x10] sm:$0xff] }
   0x5   :  { %2457 = vmatprep.subr.mxu0 %v2936_v0  ;;  %2926 = vmatprep.subr.mxu1 %v2936_v0  ;;  %v714_v11 = vld [vmem:[%s5266_s3 + $0x20] sm:$0xf]  ;;  %v3071_v14 = vld [vmem:[%s5264_s0 + $0xd8] sm:$0xff]  ;;  %v1226_v16 = vld [vmem:[%s5265_s4 + $0x10] sm:$0xff] }
   0x6   :  { %2458 = vmatpush3.msra.mxu0 %v245_v3  ;;  %2931 = vmatpush3.msra.mxu1 %v245_v3  ;;  %v713_v15 = vld [vmem:[%s5266_s3 + $0x18] sm:$0xff]  ;;  %v3098_v18 = vld [vmem:[%s5264_s0 + $0xe0] sm:$0xff]  ;;  %v712_v19 = vld [vmem:[%s5266_s3 + $0x10] sm:$0xff] }
   0x7   :  { %2459 = vmatprep.subr.mxu0 %v2936_v0  ;;  %2927 = vmatprep.subr.mxu1 %v2936_v0  ;;  %v3093_v17 = vld [vmem:[%s5264_s0 + $0x18] sm:$0xff]  ;;  %v1225_v20 = vld [vmem:[%s5265_s4 + $0x8] sm:$0xff]  ;;  %v3119_v21 = vld [vmem:[%s5264_s0 + $0x20] sm:$0xff] }
   0x8   :  { %2460 = vmatpush3.msra.mxu0 %v244_v4  ;;  %2932 = vmatpush3.msra.mxu1 %v244_v4  ;;  %v3124_v22 = vld [vmem:[%s5264_s0 + $0xe8] sm:$0xff]  ;;  %v1224_v24 = vld [vmem:[%s5265_s4] sm:$0xff]  ;;  %v3150_v26 = vld [vmem:[%s5264_s0 + $0xf0] sm:$0xff] }
   0x9   :  { %2461 = vmatprep.subr.mxu0 %v2936_v0  ;;  %2928 = vmatprep.subr.mxu1 %v2936_v0  ;;  %v711_v23 = vld [vmem:[%s5266_s3 + $0x8] sm:$0xff]  ;;  %v710_v27 = vld [vmem:[%s5266_s3] sm:$0xff]  ;;  %v3167_v28 = vld [vmem:[%s5264_s0 + $0x30] sm:$0xff] }
   0xa   :  { %2462 = vmatpush3.msra.mxu0 %v243_v5  ;;  %2933 = vmatpush3.msra.mxu1 %v243_v5  ;;  %v3145_v25 = vld [vmem:[%s5264_s0 + $0x28] sm:$0xff]  ;;  %v3172_v29 = vld [vmem:[%s5264_s0 + $0xf8] sm:$0xff]  ;;  %v3190_v31 = vld [vmem:[%s5264_s0 + $0x100] sm:$0xff] }
   0xb   :  { %2463 = vmatprep.mubr.msk.f32.mxu0 %vm2937_vm2, %v2936_v0  ;;  %2538 = vmatprep.mubr.msk.f32.mxu1 %vm2937_vm2, %v2936_v0  ;;  %v3185_v30 = vld [vmem:[%s5264_s0 + $0x38] sm:$0xff]  ;;  %v3203_v32 = vld [vmem:[%s5264_s0 + $0x40] sm:$0xff]  ;;  %v3208_v33 = vld [vmem:[%s5264_s0 + $0x108] sm:$0xff] }
   0xc   :  { %2464 = vmatmul.mubr.msk.f32.vlgmr.msra.gmra.mxu0 %vm248_vm1, %v3013_v6  ;;  %2539 = vmatmul.mubr.msk.f32.vlgmr.msra.gmra.mxu1 %vm248_vm1, %v3018_v7  ;;  %v3221_v34 = vld [vmem:[%s5264_s0 + $0x48] sm:$0xff]  ;;  %v3226_v35 = vld [vmem:[%s5264_s0 + $0x110] sm:$0xff]  ;;  %v3244_v37 = vld [vmem:[%s5264_s0 + $0x118] sm:$0xff] }
   0xd   :  { %2767 = vmatprep.subr.mxu0 %v2936_v0  ;;  %2466 = vmatprep.mubr.msk.f32.mxu0 %vm2937_vm2, %v2936_v0  ;;  %v3239_v36 = vld [vmem:[%s5264_s0 + $0x50] sm:$0xff]  ;;  %v3257_v38 = vld [vmem:[%s5264_s0 + $0x58] sm:$0xff]  ;;  %v3262_v39 = vld [vmem:[%s5264_s0 + $0x120] sm:$0xff] }
   0xe   :  { %2768 = vmatpush3.msk.msra.mxu0 %vm396_vm0, %v1228_v8  ;;  %2541 = vmatprep.mubr.msk.f32.mxu1 %vm2937_vm2, %v2936_v0  ;;  %v3275_v40 = vld [vmem:[%s5264_s0 + $0x60] sm:$0xff]  ;;  %v3280_v41 = vld [vmem:[%s5264_s0 + $0x128] sm:$0xff]  ;;  %v3298_v43 = vld [vmem:[%s5264_s0 + $0x130] sm:$0xff] }
   0xf   :  { %2610 = vmatprep.subr.mxu1 %v2936_v0  ;;  %2769 = vmatprep.subr.mxu0 %v2936_v0  ;;  %v3293_v42 = vld [vmem:[%s5264_s0 + $0x68] sm:$0xff]  ;;  %v3311_v44 = vld [vmem:[%s5264_s0 + $0x70] sm:$0xff]  ;;  %v3316_v45 = vld [vmem:[%s5264_s0 + $0x138] sm:$0xff] }
  0x10   :  { %2467 = vmatmul.mubr.msk.f32.gmra.mxu0 %vm248_vm1, %v3037_v9  ;;  %2542 = vmatmul.mubr.msk.f32.gmra.mxu1 %vm248_vm1, %v3042_v10  ;;  %v3329_v46 = vld [vmem:[%s5264_s0 + $0x78] sm:$0xff]  ;;  %v3334_v47 = vld [vmem:[%s5264_s0 + $0x140] sm:$0xff]  ;;  %v3352_v49 = vld [vmem:[%s5264_s0 + $0x148] sm:$0xff] }
  0x11   :  { %2469 = vmatprep.mubr.msk.f32.mxu0 %vm2937_vm2, %v2936_v0  ;;  %2544 = vmatprep.mubr.msk.f32.mxu1 %vm2937_vm2, %v2936_v0  ;;  %v3347_v48 = vld [vmem:[%s5264_s0 + $0x80] sm:$0xff]  ;;  %v3365_v50 = vld [vmem:[%s5264_s0 + $0x88] sm:$0xff]  ;;  %v3370_v51 = vld [vmem:[%s5264_s0 + $0x150] sm:$0xff] }
  0x12   :  { %2611 = vmatpush3.msk.msra.mxu1 %vm396_vm0, %v714_v11  ;;  %2770 = vmatpush3.msra.mxu0 %v1227_v12  ;;  %v3383_v52 = vld [vmem:[%s5264_s0 + $0x90] sm:$0xff]  ;;  %v3388_v53 = vld [vmem:[%s5264_s0 + $0x158] sm:$0xff]  ;;  %v3406_v55 = vld [vmem:[%s5264_s0 + $0x160] sm:$0xff] }
  0x13   :  { %2612 = vmatprep.subr.mxu1 %v2936_v0  ;;  %2771 = vmatprep.subr.mxu0 %v2936_v0  ;;  %v3401_v54 = vld [vmem:[%s5264_s0 + $0x98] sm:$0xff]  ;;  %v3419_v56 = vld [vmem:[%s5264_s0 + $0xa0] sm:$0xff]  ;;  %v3424_v57 = vld [vmem:[%s5264_s0 + $0x168] sm:$0xff] }
  0x14   :  { %2470 = vmatmul.mubr.msk.f32.gmra.mxu0 %vm248_vm1, %v3066_v13  ;;  %2545 = vmatmul.mubr.msk.f32.gmra.mxu1 %vm248_vm1, %v3071_v14  ;;  %v3437_v58 = vld [vmem:[%s5264_s0 + $0xa8] sm:$0xff]  ;;  %v3442_v59 = vld [vmem:[%s5264_s0 + $0x170] sm:$0xff]  ;;  %v3460_v61 = vld [vmem:[%s5264_s0 + $0x178] sm:$0xff] }
  0x15   :  { %2472 = vmatprep.mubr.msk.f32.mxu0 %vm2937_vm2, %v2936_v0  ;;  %2547 = vmatprep.mubr.msk.f32.mxu1 %vm2937_vm2, %v2936_v0  ;;  %v3455_v60 = vld [vmem:[%s5264_s0 + $0xb0] sm:$0xff]  ;;  %v3473_v62 = vld [vmem:[%s5264_s0 + $0xb8] sm:$0xff]  ;;  %v3478_v63 = vld [vmem:[%s5264_s0 + $0x180] sm:$0xff] }
  0x16   :  { %2613 = vmatpush3.msra.mxu1 %v713_v15  ;;  %2772 = vmatpush3.msra.mxu0 %v1226_v16  ;;  %v194_v1 = vld [vmem:[%s5267_s1] sm:$0xff]  ;;  %v195_v4 = vld [vmem:[%s5267_s1 + $0x8] sm:$0xff] }
  0x17   :  { %2614 = vmatprep.subr.mxu1 %v2936_v0  ;;  %2773 = vmatprep.subr.mxu0 %v2936_v0  ;;  %v3494_v2 = vld [vmem:[%s5264_s0 + $0xc0] sm:$0xff]  ;;  %v1175_v3 = vadd.f32 %v194_v1, %v3013_v6  ;;  %v1176_v5 = vadd.f32 %v195_v4, %v3037_v9  ;;  %v196_v6 = vld [vmem:[%s5267_s1 + $0x10] sm:$0xff]  ;;  %v197_v9 = vld [vmem:[%s5267_s1 + $0x18] sm:$0xff] }
  0x18   :  { %2473 = vmatmul.mubr.msk.f32.gmra.mxu0 %vm248_vm1, %v3093_v17  ;;  %2548 = vmatmul.mubr.msk.f32.gmra.mxu1 %vm248_vm1, %v3098_v18  ;;  %v1177_v8 = vadd.f32 %v196_v6, %v3066_v13  ;;  %v1178_v11 = vadd.f32 %v197_v9, %v3093_v17  ;;  %v198_v12 = vld [vmem:[%s5267_s1 + $0x20] sm:$0xff]  ;;  %v199_v15 = vld [vmem:[%s5267_s1 + $0x28] sm:$0xff]  ;;  %v200_v17 = vld [vmem:[%s5267_s1 + $0x30] sm:$0xff] }
  0x19   :  { %2475 = vmatprep.mubr.msk.f32.mxu0 %vm2937_vm2, %v2936_v0  ;;  %2550 = vmatprep.mubr.msk.f32.mxu1 %vm2937_vm2, %v2936_v0  ;;  %v1179_v13 = vadd.f32 %v198_v12, %v3119_v21  ;;  %v1180_v16 = vadd.f32 %v199_v15, %v3145_v25 }
  0x1a   :  { %2615 = vmatpush3.msra.mxu1 %v712_v19  ;;  %2774 = vmatpush3.msra.mxu0 %v1225_v20  ;;  %v1181_v19 = vadd.f32 %v200_v17, %v3167_v28  ;;  %v201_v20 = vld [vmem:[%s5267_s1 + $0x38] sm:$0xff] }
  0x1b   :  { %2616 = vmatprep.subr.mxu1 %v2936_v0  ;;  %2775 = vmatprep.subr.mxu0 %v2936_v0 }
  0x1c   :  { %2476 = vmatmul.mubr.msk.f32.gmra.mxu0 %vm248_vm1, %v3119_v21  ;;  %2551 = vmatmul.mubr.msk.f32.gmra.mxu1 %vm248_vm1, %v3124_v22  ;;  %v1182_v21 = vadd.f32 %v201_v20, %v3185_v30 }
  0x1d   :  { %2478 = vmatprep.mubr.msk.f32.mxu0 %vm2937_vm2, %v2936_v0  ;;  %2553 = vmatprep.mubr.msk.f32.mxu1 %vm2937_vm2, %v2936_v0 }
  0x1e   :  { %2617 = vmatpush3.msra.mxu1 %v711_v23  ;;  %2776 = vmatpush3.msra.mxu0 %v1224_v24  ;;  %v202_v23 = vld [vmem:[%s5267_s1 + $0x40] sm:$0xff] }
  0x1f   :  { %2618 = vmatprep.subr.mxu1 %v2936_v0  ;;  %v1183_v24 = vadd.f32 %v202_v23, %v3203_v32 }
  0x20   :  { %2479 = vmatmul.mubr.msk.f32.gmra.mxu0 %vm248_vm1, %v3145_v25  ;;  %2554 = vmatmul.mubr.msk.f32.gmra.mxu1 %vm248_vm1, %v3150_v26  ;;  %v203_v25 = vld [vmem:[%s5267_s1 + $0x48] sm:$0xff] }
  0x21   :  { %2481 = vmatprep.mubr.msk.f32.mxu0 %vm2937_vm2, %v2936_v0  ;;  %2556 = vmatprep.mubr.msk.f32.mxu1 %vm2937_vm2, %v2936_v0 }
  0x22   :  { %2619 = vmatpush3.msra.mxu1 %v710_v27  ;;  %v1184_v27 = vadd.f32 %v203_v25, %v3221_v34 }
  0x24   :  { %2482 = vmatmul.mubr.msk.f32.gmra.mxu0 %vm248_vm1, %v3167_v28  ;;  %2557 = vmatmul.mubr.msk.f32.gmra.mxu1 %vm248_vm1, %v3172_v29  ;;  %v204_v28 = vld [vmem:[%s5267_s1 + $0x50] sm:$0xff] }
  0x25   :  { %2484 = vmatprep.mubr.msk.f32.mxu0 %vm2937_vm2, %v2936_v0  ;;  %2559 = vmatprep.mubr.msk.f32.mxu1 %vm2937_vm2, %v2936_v0 }
  0x28   :  { %2485 = vmatmul.mubr.msk.f32.gmra.mxu0 %vm248_vm1, %v3185_v30  ;;  %2560 = vmatmul.mubr.msk.f32.gmra.mxu1 %vm248_vm1, %v3190_v31  ;;  %v1185_v30 = vadd.f32 %v204_v28, %v3239_v36 }
  0x29   :  { %2487 = vmatprep.mubr.msk.f32.mxu0 %vm2937_vm2, %v2936_v0  ;;  %2562 = vmatprep.mubr.msk.f32.mxu1 %vm2937_vm2, %v2936_v0 }
  0x2c   :  { %2488 = vmatmul.mubr.msk.f32.gmra.mxu0 %vm248_vm1, %v3203_v32  ;;  %2563 = vmatmul.mubr.msk.f32.gmra.mxu1 %vm248_vm1, %v3208_v33  ;;  %v205_v32 = vld [vmem:[%s5267_s1 + $0x58] sm:$0xff] }
  0x2d   :  { %2490 = vmatprep.mubr.msk.f32.mxu0 %vm2937_vm2, %v2936_v0  ;;  %2565 = vmatprep.mubr.msk.f32.mxu1 %vm2937_vm2, %v2936_v0 }
  0x30   :  { %2491 = vmatmul.mubr.msk.f32.gmra.mxu0 %vm248_vm1, %v3221_v34  ;;  %2566 = vmatmul.mubr.msk.f32.gmra.mxu1 %vm248_vm1, %v3226_v35  ;;  %v1186_v34 = vadd.f32 %v205_v32, %v3257_v38 }
  0x31   :  { %2493 = vmatprep.mubr.msk.f32.mxu0 %vm2937_vm2, %v2936_v0  ;;  %2568 = vmatprep.mubr.msk.f32.mxu1 %vm2937_vm2, %v2936_v0 }
  0x34   :  { %2494 = vmatmul.mubr.msk.f32.gmra.mxu0 %vm248_vm1, %v3239_v36  ;;  %2569 = vmatmul.mubr.msk.f32.gmra.mxu1 %vm248_vm1, %v3244_v37  ;;  %v206_v36 = vld [vmem:[%s5267_s1 + $0x60] sm:$0xff] }
  0x35   :  { %2496 = vmatprep.mubr.msk.f32.mxu0 %vm2937_vm2, %v2936_v0  ;;  %2571 = vmatprep.mubr.msk.f32.mxu1 %vm2937_vm2, %v2936_v0 }
  0x38   :  { %2497 = vmatmul.mubr.msk.f32.gmra.mxu0 %vm248_vm1, %v3257_v38  ;;  %2572 = vmatmul.mubr.msk.f32.gmra.mxu1 %vm248_vm1, %v3262_v39  ;;  %v207_v38 = vld [vmem:[%s5267_s1 + $0x68] sm:$0xff] }
  0x39   :  { %2499 = vmatprep.mubr.msk.f32.mxu0 %vm2937_vm2, %v2936_v0  ;;  %2574 = vmatprep.mubr.msk.f32.mxu1 %vm2937_vm2, %v2936_v0 }
  0x3c   :  { %2500 = vmatmul.mubr.msk.f32.gmra.mxu0 %vm248_vm1, %v3275_v40  ;;  %2575 = vmatmul.mubr.msk.f32.gmra.mxu1 %vm248_vm1, %v3280_v41 }
  0x3d   :  { %2502 = vmatprep.mubr.msk.f32.mxu0 %vm2937_vm2, %v2936_v0  ;;  %2577 = vmatprep.mubr.msk.f32.mxu1 %vm2937_vm2, %v2936_v0 }
  0x40   :  { %2503 = vmatmul.mubr.msk.f32.gmra.mxu0 %vm248_vm1, %v3293_v42  ;;  %2578 = vmatmul.mubr.msk.f32.gmra.mxu1 %vm248_vm1, %v3298_v43 }
  0x41   :  { %2505 = vmatprep.mubr.msk.f32.mxu0 %vm2937_vm2, %v2936_v0  ;;  %2580 = vmatprep.mubr.msk.f32.mxu1 %vm2937_vm2, %v2936_v0 }
  0x44   :  { %2506 = vmatmul.mubr.msk.f32.gmra.mxu0 %vm248_vm1, %v3311_v44  ;;  %2581 = vmatmul.mubr.msk.f32.gmra.mxu1 %vm248_vm1, %v3316_v45 }
  0x45   :  { %2508 = vmatprep.mubr.msk.f32.mxu0 %vm2937_vm2, %v2936_v0  ;;  %2583 = vmatprep.mubr.msk.f32.mxu1 %vm2937_vm2, %v2936_v0 }
  0x48   :  { %2509 = vmatmul.mubr.msk.f32.gmra.mxu0 %vm248_vm1, %v3329_v46  ;;  %2584 = vmatmul.mubr.msk.f32.gmra.mxu1 %vm248_vm1, %v3334_v47 }
  0x49   :  { %2511 = vmatprep.mubr.msk.f32.mxu0 %vm2937_vm2, %v2936_v0  ;;  %2586 = vmatprep.mubr.msk.f32.mxu1 %vm2937_vm2, %v2936_v0 }
  0x4c   :  { %2512 = vmatmul.mubr.msk.f32.gmra.mxu0 %vm248_vm1, %v3347_v48  ;;  %2587 = vmatmul.mubr.msk.f32.gmra.mxu1 %vm248_vm1, %v3352_v49 }
  0x4d   :  { %2514 = vmatprep.mubr.msk.f32.mxu0 %vm2937_vm2, %v2936_v0  ;;  %2589 = vmatprep.mubr.msk.f32.mxu1 %vm2937_vm2, %v2936_v0 }
  0x50   :  { %2515 = vmatmul.mubr.msk.f32.gmra.mxu0 %vm248_vm1, %v3365_v50  ;;  %2590 = vmatmul.mubr.msk.f32.gmra.mxu1 %vm248_vm1, %v3370_v51 }
  0x51   :  { %2517 = vmatprep.mubr.msk.f32.mxu0 %vm2937_vm2, %v2936_v0  ;;  %2592 = vmatprep.mubr.msk.f32.mxu1 %vm2937_vm2, %v2936_v0 }
  0x54   :  { %2518 = vmatmul.mubr.msk.f32.gmra.mxu0 %vm248_vm1, %v3383_v52  ;;  %2593 = vmatmul.mubr.msk.f32.gmra.mxu1 %vm248_vm1, %v3388_v53 }
  0x55   :  { %2520 = vmatprep.mubr.msk.f32.mxu0 %vm2937_vm2, %v2936_v0  ;;  %2595 = vmatprep.mubr.msk.f32.mxu1 %vm2937_vm2, %v2936_v0 }
  0x58   :  { %2521 = vmatmul.mubr.msk.f32.gmra.mxu0 %vm248_vm1, %v3401_v54  ;;  %2596 = vmatmul.mubr.msk.f32.gmra.mxu1 %vm248_vm1, %v3406_v55 }
  0x59   :  { %2523 = vmatprep.mubr.msk.f32.mxu0 %vm2937_vm2, %v2936_v0  ;;  %2598 = vmatprep.mubr.msk.f32.mxu1 %vm2937_vm2, %v2936_v0 }
  0x5c   :  { %2524 = vmatmul.mubr.msk.f32.gmra.mxu0 %vm248_vm1, %v3419_v56  ;;  %2599 = vmatmul.mubr.msk.f32.gmra.mxu1 %vm248_vm1, %v3424_v57 }
  0x5d   :  { %2526 = vmatprep.mubr.msk.f32.mxu0 %vm2937_vm2, %v2936_v0  ;;  %2601 = vmatprep.mubr.msk.f32.mxu1 %vm2937_vm2, %v2936_v0 }
  0x60   :  { %2527 = vmatmul.mubr.msk.f32.gmra.mxu0 %vm248_vm1, %v3437_v58  ;;  %2602 = vmatmul.mubr.msk.f32.gmra.mxu1 %vm248_vm1, %v3442_v59 }
  0x61   :  { %2529 = vmatprep.mubr.msk.f32.mxu0 %vm2937_vm2, %v2936_v0  ;;  %2604 = vmatprep.mubr.msk.f32.mxu1 %vm2937_vm2, %v2936_v0 }
  0x64   :  { %2530 = vmatmul.mubr.msk.f32.gmra.mxu0 %vm248_vm1, %v3455_v60  ;;  %2605 = vmatmul.mubr.msk.f32.gmra.mxu1 %vm248_vm1, %v3460_v61 }
  0x65   :  { %2532 = vmatprep.mubr.msk.f32.mxu0 %vm2937_vm2, %v2936_v0  ;;  %2607 = vmatprep.mubr.msk.f32.mxu1 %vm2937_vm2, %v2936_v0 }
  0x68   :  { %2533 = vmatmul.mubr.msk.f32.gmra.mxu0 %vm248_vm1, %v3473_v62  ;;  %2608 = vmatmul.mubr.msk.f32.gmra.mxu1 %vm248_vm1, %v3478_v63 }
  0x69   :  { %2535 = vmatprep.mubr.msk.f32.mxu0 %vm2937_vm2, %v2936_v0  ;;  %2620 = vmatprep.mubr.msk.f32.mxu1 %vm2937_vm2, %v2936_v0 }
  0x6c   :  { %2536 = vmatmul.mubr.msk.f32.gmra.mxu0 %vm248_vm1, %v3494_v2  ;;  %2621 = vmatmul.mubr.msk.f32.vlgmr.msra.gmra.mxu1 %vm248_vm1, %v194_v1  ;;  %v1187_v1 = vadd.f32 %v206_v36, %v3275_v40  ;;  %v208_v40 = vld [vmem:[%s5267_s1 + $0x70] sm:$0xff] }
  0x6d   :  { %2623 = vmatprep.mubr.msk.f32.mxu1 %vm2937_vm2, %v2936_v0  ;;  %2777 = vmatprep.mubr.msk.f32.mxu0 %vm2937_vm2, %v2936_v0 }
  0x70   :  { %2624 = vmatmul.mubr.msk.f32.gmra.mxu1 %vm248_vm1, %v195_v4  ;;  %2778 = vmatmul.mubr.msk.f32.vlgmr.msra.gmra.mxu0 %vm248_vm1, %v1175_v3  ;;  %v1188_v3 = vadd.f32 %v207_v38, %v3293_v42  ;;  %v1189_v4 = vadd.f32 %v208_v40, %v3311_v44  ;;  %v209_v42 = vld [vmem:[%s5267_s1 + $0x78] sm:$0xff] }
  0x71   :  { %2626 = vmatprep.mubr.msk.f32.mxu1 %vm2937_vm2, %v2936_v0  ;;  %2780 = vmatprep.mubr.msk.f32.mxu0 %vm2937_vm2, %v2936_v0  ;;  %v1190_v44 = vadd.f32 %v209_v42, %v3329_v46  ;;  %v2140_v46 = vld [vmem:[%s5270_s6] ss:$0 sm:$0xff] }
  0x72   :  { %96 = vst.msk [vmem:[%s5271_s8] sm:$0xff] %vm39_vm3, %v2140_v46  ;;  %97 = vst.msk [vmem:[%s5271_s8 + $0x8] sm:$0xff] %vm39_vm3, %v2140_v46 }
  0x73   :  { %98 = vst.msk [vmem:[%s5271_s8 + $0x10] sm:$0xff] %vm39_vm3, %v2140_v46  ;;  %99 = vst.msk [vmem:[%s5271_s8 + $0x18] sm:$0xff] %vm39_vm3, %v2140_v46 }
  0x74   :  { %2627 = vmatmul.mubr.msk.f32.gmra.mxu1 %vm248_vm1, %v196_v6  ;;  %2781 = vmatmul.mubr.msk.f32.gmra.mxu0 %vm248_vm1, %v1176_v5  ;;  %v2139_v5 = vld [vmem:[%s5268_s5] ss:$0 sm:$0xff]  ;;  %100 = vst.msk [vmem:[%s5271_s8 + $0x20] sm:$0xff] %vm39_vm3, %v2140_v46  ;;  %101 = vst.msk [vmem:[%s5271_s8 + $0x28] sm:$0xff] %vm39_vm3, %v2140_v46 }
  0x75   :  { %2629 = vmatprep.mubr.msk.f32.mxu1 %vm2937_vm2, %v2936_v0  ;;  %2783 = vmatprep.mubr.msk.f32.mxu0 %vm2937_vm2, %v2936_v0  ;;  %40 = vst.msk [vmem:[%s5269_s7] sm:$0xff] %vm39_vm3, %v2139_v5  ;;  %41 = vst.msk [vmem:[%s5269_s7 + $0x8] sm:$0xff] %vm39_vm3, %v2139_v5  ;;  %v210_v6 = vld [vmem:[%s5267_s1 + $0x80] sm:$0xff] }
  0x76   :  { %42 = vst.msk [vmem:[%s5269_s7 + $0x10] sm:$0xff] %vm39_vm3, %v2139_v5  ;;  %43 = vst.msk [vmem:[%s5269_s7 + $0x18] sm:$0xff] %vm39_vm3, %v2139_v5 }
  0x77   :  { %44 = vst.msk [vmem:[%s5269_s7 + $0x20] sm:$0xff] %vm39_vm3, %v2139_v5  ;;  %45 = vst.msk [vmem:[%s5269_s7 + $0x28] sm:$0xff] %vm39_vm3, %v2139_v5 }
  0x78   :  { %2630 = vmatmul.mubr.msk.f32.gmra.mxu1 %vm248_vm1, %v197_v9  ;;  %2784 = vmatmul.mubr.msk.f32.gmra.mxu0 %vm248_vm1, %v1177_v8  ;;  %46 = vst.msk [vmem:[%s5269_s7 + $0x30] sm:$0xff] %vm39_vm3, %v2139_v5  ;;  %47 = vst.msk [vmem:[%s5269_s7 + $0x38] sm:$0xff] %vm39_vm3, %v2139_v5  ;;  %v1191_v8 = vadd.f32 %v210_v6, %v3347_v48  ;;  %v211_v9 = vld [vmem:[%s5267_s1 + $0x88] sm:$0xff] }
  0x79   :  { %2632 = vmatprep.mubr.msk.f32.mxu1 %vm2937_vm2, %v2936_v0  ;;  %2786 = vmatprep.mubr.msk.f32.mxu0 %vm2937_vm2, %v2936_v0  ;;  %48 = vst.msk [vmem:[%s5269_s7 + $0x40] sm:$0xff] %vm39_vm3, %v2139_v5  ;;  %49 = vst.msk [vmem:[%s5269_s7 + $0x48] sm:$0xff] %vm39_vm3, %v2139_v5  ;;  %v1192_v48 = vadd.f32 %v211_v9, %v3365_v50  ;;  %v213_v50 = vld [vmem:[%s5267_s1 + $0x98] sm:$0xff] }
  0x7a   :  { %50 = vst.msk [vmem:[%s5269_s7 + $0x50] sm:$0xff] %vm39_vm3, %v2139_v5  ;;  %51 = vst.msk [vmem:[%s5269_s7 + $0x58] sm:$0xff] %vm39_vm3, %v2139_v5 }
  0x7b   :  { %52 = vst.msk [vmem:[%s5269_s7 + $0x60] sm:$0xff] %vm39_vm3, %v2139_v5  ;;  %53 = vst.msk [vmem:[%s5269_s7 + $0x68] sm:$0xff] %vm39_vm3, %v2139_v5 }
  0x7c   :  { %2633 = vmatmul.mubr.msk.f32.gmra.mxu1 %vm248_vm1, %v198_v12  ;;  %2787 = vmatmul.mubr.msk.f32.gmra.mxu0 %vm248_vm1, %v1178_v11  ;;  %54 = vst.msk [vmem:[%s5269_s7 + $0x70] sm:$0xff] %vm39_vm3, %v2139_v5  ;;  %55 = vst.msk [vmem:[%s5269_s7 + $0x78] sm:$0xff] %vm39_vm3, %v2139_v5  ;;  %v212_v11 = vld [vmem:[%s5267_s1 + $0x90] sm:$0xff] }
  0x7d   :  { %2635 = vmatprep.mubr.msk.f32.mxu1 %vm2937_vm2, %v2936_v0  ;;  %2789 = vmatprep.mubr.msk.f32.mxu0 %vm2937_vm2, %v2936_v0  ;;  %56 = vst.msk [vmem:[%s5269_s7 + $0x80] sm:$0xff] %vm39_vm3, %v2139_v5  ;;  %57 = vst.msk [vmem:[%s5269_s7 + $0x88] sm:$0xff] %vm39_vm3, %v2139_v5  ;;  %v1193_v12 = vadd.f32 %v212_v11, %v3383_v52  ;;  %v214_v52 = vld [vmem:[%s5267_s1 + $0xa0] sm:$0xff] }
  0x7e   :  { %58 = vst.msk [vmem:[%s5269_s7 + $0x90] sm:$0xff] %vm39_vm3, %v2139_v5  ;;  %59 = vst.msk [vmem:[%s5269_s7 + $0x98] sm:$0xff] %vm39_vm3, %v2139_v5 }
  0x7f   :  { %60 = vst.msk [vmem:[%s5269_s7 + $0xa0] sm:$0xff] %vm39_vm3, %v2139_v5  ;;  %61 = vst.msk [vmem:[%s5269_s7 + $0xa8] sm:$0xff] %vm39_vm3, %v2139_v5 }
  0x80   :  { %2636 = vmatmul.mubr.msk.f32.gmra.mxu1 %vm248_vm1, %v199_v15  ;;  %2790 = vmatmul.mubr.msk.f32.gmra.mxu0 %vm248_vm1, %v1179_v13  ;;  %62 = vst.msk [vmem:[%s5269_s7 + $0xb0] sm:$0xff] %vm39_vm3, %v2139_v5  ;;  %63 = vst.msk [vmem:[%s5269_s7 + $0xb8] sm:$0xff] %vm39_vm3, %v2139_v5  ;;  %v1194_v13 = vadd.f32 %v213_v50, %v3401_v54  ;;  %v1195_v15 = vadd.f32 %v214_v52, %v3419_v56  ;;  %v215_v54 = vld [vmem:[%s5267_s1 + $0xa8] sm:$0xff]  ;;  %v216_v56 = vld [vmem:[%s5267_s1 + $0xb0] sm:$0xff] }
  0x81   :  { %2638 = vmatprep.mubr.msk.f32.mxu1 %vm2937_vm2, %v2936_v0  ;;  %2792 = vmatprep.mubr.msk.f32.mxu0 %vm2937_vm2, %v2936_v0  ;;  %64 = vst.msk [vmem:[%s5269_s7 + $0xc0] sm:$0xff] %vm39_vm3, %v2139_v5  ;;  %65 = vst.msk [vmem:[%s5269_s7 + $0xc8] sm:$0xff] %vm39_vm3, %v2139_v5 }
  0x82   :  { %66 = vst.msk [vmem:[%s5269_s7 + $0xd0] sm:$0xff] %vm39_vm3, %v2139_v5  ;;  %67 = vst.msk [vmem:[%s5269_s7 + $0xd8] sm:$0xff] %vm39_vm3, %v2139_v5 }
  0x83   :  { %68 = vst.msk [vmem:[%s5269_s7 + $0xe0] sm:$0xff] %vm39_vm3, %v2139_v5  ;;  %69 = vst.msk [vmem:[%s5269_s7 + $0xe8] sm:$0xff] %vm39_vm3, %v2139_v5 }
  0x84   :  { %2639 = vmatmul.mubr.msk.f32.gmra.mxu1 %vm248_vm1, %v200_v17  ;;  %2793 = vmatmul.mubr.msk.f32.gmra.mxu0 %vm248_vm1, %v1180_v16  ;;  %70 = vst.msk [vmem:[%s5269_s7 + $0xf0] sm:$0xff] %vm39_vm3, %v2139_v5  ;;  %71 = vst.msk [vmem:[%s5269_s7 + $0xf8] sm:$0xff] %vm39_vm3, %v2139_v5  ;;  %v1196_v16 = vadd.f32 %v215_v54, %v3437_v58  ;;  %v1197_v17 = vadd.f32 %v216_v56, %v3455_v60  ;;  %v217_v58 = vld [vmem:[%s5267_s1 + $0xb8] sm:$0xff]  ;;  %v218_v60 = vld [vmem:[%s5267_s1 + $0xc0] sm:$0xff] }
  0x85   :  { %2641 = vmatprep.mubr.msk.f32.mxu1 %vm2937_vm2, %v2936_v0  ;;  %2795 = vmatprep.mubr.msk.f32.mxu0 %vm2937_vm2, %v2936_v0  ;;  %72 = vst.msk [vmem:[%s5269_s7 + $0x100] sm:$0xff] %vm39_vm3, %v2139_v5  ;;  %73 = vst.msk [vmem:[%s5269_s7 + $0x108] sm:$0xff] %vm39_vm3, %v2139_v5 }
  0x86   :  { %74 = vst.msk [vmem:[%s5269_s7 + $0x110] sm:$0xff] %vm39_vm3, %v2139_v5  ;;  %75 = vst.msk [vmem:[%s5269_s7 + $0x118] sm:$0xff] %vm39_vm3, %v2139_v5 }
  0x87   :  { %76 = vst.msk [vmem:[%s5269_s7 + $0x120] sm:$0xff] %vm39_vm3, %v2139_v5  ;;  %77 = vst.msk [vmem:[%s5269_s7 + $0x128] sm:$0xff] %vm39_vm3, %v2139_v5 }
  0x88   :  { %2642 = vmatmul.mubr.msk.f32.gmra.mxu1 %vm248_vm1, %v201_v20  ;;  %2796 = vmatmul.mubr.msk.f32.gmra.mxu0 %vm248_vm1, %v1181_v19  ;;  %78 = vst.msk [vmem:[%s5269_s7 + $0x130] sm:$0xff] %vm39_vm3, %v2139_v5  ;;  %79 = vst.msk [vmem:[%s5269_s7 + $0x138] sm:$0xff] %vm39_vm3, %v2139_v5  ;;  %v1198_v19 = vadd.f32 %v217_v58, %v3473_v62  ;;  %v1199_v62 = vadd.f32 %v218_v60, %v3494_v2 }
  0x89   :  { %2644 = vmatprep.mubr.msk.f32.mxu1 %vm2937_vm2, %v2936_v0  ;;  %2798 = vmatprep.mubr.msk.f32.mxu0 %vm2937_vm2, %v2936_v0  ;;  %80 = vst.msk [vmem:[%s5269_s7 + $0x140] sm:$0xff] %vm39_vm3, %v2139_v5  ;;  %81 = vst.msk [vmem:[%s5269_s7 + $0x148] sm:$0xff] %vm39_vm3, %v2139_v5 }
  0x8a   :  { %82 = vst.msk [vmem:[%s5269_s7 + $0x150] sm:$0xff] %vm39_vm3, %v2139_v5  ;;  %83 = vst.msk [vmem:[%s5269_s7 + $0x158] sm:$0xff] %vm39_vm3, %v2139_v5 }
  0x8b   :  { %84 = vst.msk [vmem:[%s5269_s7 + $0x160] sm:$0xff] %vm39_vm3, %v2139_v5  ;;  %85 = vst.msk [vmem:[%s5269_s7 + $0x168] sm:$0xff] %vm39_vm3, %v2139_v5 }
  0x8c   :  { %2645 = vmatmul.mubr.msk.f32.gmra.mxu1 %vm248_vm1, %v202_v23  ;;  %2799 = vmatmul.mubr.msk.f32.gmra.mxu0 %vm248_vm1, %v1182_v21  ;;  %86 = vst.msk [vmem:[%s5269_s7 + $0x170] sm:$0xff] %vm39_vm3, %v2139_v5  ;;  %87 = vst.msk [vmem:[%s5269_s7 + $0x178] sm:$0xff] %vm39_vm3, %v2139_v5  ;;  %v219_v23 = vld [vmem:[%s5267_s1 + $0xc8] sm:$0xff] }
  0x8d   :  { %2647 = vmatprep.mubr.msk.f32.mxu1 %vm2937_vm2, %v2936_v0  ;;  %2801 = vmatprep.mubr.msk.f32.mxu0 %vm2937_vm2, %v2936_v0  ;;  %88 = vst.msk [vmem:[%s5269_s7 + $0x180] sm:$0xff] %vm39_vm3, %v2139_v5  ;;  %102 = vst.msk [vmem:[%s5271_s8 + $0x30] sm:$0xff] %vm39_vm3, %v2140_v46  ;;  %v1200_v2 = vadd.f32 %v219_v23, %v3018_v7  ;;  %v222_v5 = vld [vmem:[%s5267_s1 + $0xe0] sm:$0xff] }
  0x8e   :  { %103 = vst.msk [vmem:[%s5271_s8 + $0x38] sm:$0xff] %vm39_vm3, %v2140_v46  ;;  %104 = vst.msk [vmem:[%s5271_s8 + $0x40] sm:$0xff] %vm39_vm3, %v2140_v46 }
  0x8f   :  { %105 = vst.msk [vmem:[%s5271_s8 + $0x48] sm:$0xff] %vm39_vm3, %v2140_v46  ;;  %106 = vst.msk [vmem:[%s5271_s8 + $0x50] sm:$0xff] %vm39_vm3, %v2140_v46 }
  0x90   :  { %2648 = vmatmul.mubr.msk.f32.gmra.mxu1 %vm248_vm1, %v203_v25  ;;  %2802 = vmatmul.mubr.msk.f32.gmra.mxu0 %vm248_vm1, %v1183_v24  ;;  %107 = vst.msk [vmem:[%s5271_s8 + $0x58] sm:$0xff] %vm39_vm3, %v2140_v46  ;;  %108 = vst.msk [vmem:[%s5271_s8 + $0x60] sm:$0xff] %vm39_vm3, %v2140_v46 }
  0x91   :  { %2650 = vmatprep.mubr.msk.f32.mxu1 %vm2937_vm2, %v2936_v0  ;;  %2804 = vmatprep.mubr.msk.f32.mxu0 %vm2937_vm2, %v2936_v0  ;;  %109 = vst.msk [vmem:[%s5271_s8 + $0x68] sm:$0xff] %vm39_vm3, %v2140_v46  ;;  %110 = vst.msk [vmem:[%s5271_s8 + $0x70] sm:$0xff] %vm39_vm3, %v2140_v46 }
  0x92   :  { %111 = vst.msk [vmem:[%s5271_s8 + $0x78] sm:$0xff] %vm39_vm3, %v2140_v46  ;;  %112 = vst.msk [vmem:[%s5271_s8 + $0x80] sm:$0xff] %vm39_vm3, %v2140_v46 }
  0x93   :  { %113 = vst.msk [vmem:[%s5271_s8 + $0x88] sm:$0xff] %vm39_vm3, %v2140_v46  ;;  %114 = vst.msk [vmem:[%s5271_s8 + $0x90] sm:$0xff] %vm39_vm3, %v2140_v46 }
  0x94   :  { %2651 = vmatmul.mubr.msk.f32.gmra.mxu1 %vm248_vm1, %v204_v28  ;;  %2805 = vmatmul.mubr.msk.f32.gmra.mxu0 %vm248_vm1, %v1184_v27  ;;  %115 = vst.msk [vmem:[%s5271_s8 + $0x98] sm:$0xff] %vm39_vm3, %v2140_v46  ;;  %116 = vst.msk [vmem:[%s5271_s8 + $0xa0] sm:$0xff] %vm39_vm3, %v2140_v46 }
  0x95   :  { %2653 = vmatprep.mubr.msk.f32.mxu1 %vm2937_vm2, %v2936_v0  ;;  %2807 = vmatprep.mubr.msk.f32.mxu0 %vm2937_vm2, %v2936_v0  ;;  %117 = vst.msk [vmem:[%s5271_s8 + $0xa8] sm:$0xff] %vm39_vm3, %v2140_v46  ;;  %118 = vst.msk [vmem:[%s5271_s8 + $0xb0] sm:$0xff] %vm39_vm3, %v2140_v46 }
  0x96   :  { %119 = vst.msk [vmem:[%s5271_s8 + $0xb8] sm:$0xff] %vm39_vm3, %v2140_v46  ;;  %120 = vst.msk [vmem:[%s5271_s8 + $0xc0] sm:$0xff] %vm39_vm3, %v2140_v46 }
  0x97   :  { %121 = vst.msk [vmem:[%s5271_s8 + $0xc8] sm:$0xff] %vm39_vm3, %v2140_v46  ;;  %122 = vst.msk [vmem:[%s5271_s8 + $0xd0] sm:$0xff] %vm39_vm3, %v2140_v46 }
  0x98   :  { %2654 = vmatmul.mubr.msk.f32.gmra.mxu1 %vm248_vm1, %v205_v32  ;;  %2808 = vmatmul.mubr.msk.f32.gmra.mxu0 %vm248_vm1, %v1185_v30  ;;  %123 = vst.msk [vmem:[%s5271_s8 + $0xd8] sm:$0xff] %vm39_vm3, %v2140_v46  ;;  %124 = vst.msk [vmem:[%s5271_s8 + $0xe0] sm:$0xff] %vm39_vm3, %v2140_v46  ;;  %v220_v30 = vld [vmem:[%s5267_s1 + $0xd0] sm:$0xff] }
  0x99   :  { %2656 = vmatprep.mubr.msk.f32.mxu1 %vm2937_vm2, %v2936_v0  ;;  %2810 = vmatprep.mubr.msk.f32.mxu0 %vm2937_vm2, %v2936_v0  ;;  %125 = vst.msk [vmem:[%s5271_s8 + $0xe8] sm:$0xff] %vm39_vm3, %v2140_v46  ;;  %126 = vst.msk [vmem:[%s5271_s8 + $0xf0] sm:$0xff] %vm39_vm3, %v2140_v46  ;;  %v1201_v7 = vadd.f32 %v220_v30, %v3042_v10 }
  0x9a   :  { %127 = vst.msk [vmem:[%s5271_s8 + $0xf8] sm:$0xff] %vm39_vm3, %v2140_v46  ;;  %128 = vst.msk [vmem:[%s5271_s8 + $0x100] sm:$0xff] %vm39_vm3, %v2140_v46 }
  0x9b   :  { %129 = vst.msk [vmem:[%s5271_s8 + $0x108] sm:$0xff] %vm39_vm3, %v2140_v46  ;;  %130 = vst.msk [vmem:[%s5271_s8 + $0x110] sm:$0xff] %vm39_vm3, %v2140_v46 }
  0x9c   :  { %2657 = vmatmul.mubr.msk.f32.gmra.mxu1 %vm248_vm1, %v206_v36  ;;  %2811 = vmatmul.mubr.msk.f32.gmra.mxu0 %vm248_vm1, %v1186_v34  ;;  %131 = vst.msk [vmem:[%s5271_s8 + $0x118] sm:$0xff] %vm39_vm3, %v2140_v46  ;;  %132 = vst.msk [vmem:[%s5271_s8 + $0x120] sm:$0xff] %vm39_vm3, %v2140_v46 }
  0x9d   :  { %2659 = vmatprep.mubr.msk.f32.mxu1 %vm2937_vm2, %v2936_v0  ;;  %2813 = vmatprep.mubr.msk.f32.mxu0 %vm2937_vm2, %v2936_v0  ;;  %133 = vst.msk [vmem:[%s5271_s8 + $0x128] sm:$0xff] %vm39_vm3, %v2140_v46  ;;  %134 = vst.msk [vmem:[%s5271_s8 + $0x130] sm:$0xff] %vm39_vm3, %v2140_v46 }
  0x9e   :  { %135 = vst.msk [vmem:[%s5271_s8 + $0x138] sm:$0xff] %vm39_vm3, %v2140_v46  ;;  %136 = vst.msk [vmem:[%s5271_s8 + $0x140] sm:$0xff] %vm39_vm3, %v2140_v46 }
  0x9f   :  { %137 = vst.msk [vmem:[%s5271_s8 + $0x148] sm:$0xff] %vm39_vm3, %v2140_v46  ;;  %138 = vst.msk [vmem:[%s5271_s8 + $0x150] sm:$0xff] %vm39_vm3, %v2140_v46 }
  0xa0   :  { %2660 = vmatmul.mubr.msk.f32.gmra.mxu1 %vm248_vm1, %v207_v38  ;;  %2814 = vmatmul.mubr.msk.f32.gmra.mxu0 %vm248_vm1, %v1187_v1  ;;  %139 = vst.msk [vmem:[%s5271_s8 + $0x158] sm:$0xff] %vm39_vm3, %v2140_v46  ;;  %140 = vst.msk [vmem:[%s5271_s8 + $0x160] sm:$0xff] %vm39_vm3, %v2140_v46  ;;  %v221_v38 = vld [vmem:[%s5267_s1 + $0xd8] sm:$0xff] }
  0xa1   :  { %2662 = vmatprep.mubr.msk.f32.mxu1 %vm2937_vm2, %v2936_v0  ;;  %2816 = vmatprep.mubr.msk.f32.mxu0 %vm2937_vm2, %v2936_v0  ;;  %141 = vst.msk [vmem:[%s5271_s8 + $0x168] sm:$0xff] %vm39_vm3, %v2140_v46  ;;  %142 = vst.msk [vmem:[%s5271_s8 + $0x170] sm:$0xff] %vm39_vm3, %v2140_v46  ;;  %v1202_v10 = vadd.f32 %v221_v38, %v3071_v14  ;;  %v1203_v14 = vadd.f32 %v222_v5, %v3098_v18 }
  0xa2   :  { %143 = vst.msk [vmem:[%s5271_s8 + $0x178] sm:$0xff] %vm39_vm3, %v2140_v46  ;;  %144 = vst.msk [vmem:[%s5271_s8 + $0x180] sm:$0xff] %vm39_vm3, %v2140_v46 }
  0xa4   :  { %2663 = vmatmul.mubr.msk.f32.gmra.mxu1 %vm248_vm1, %v208_v40  ;;  %2817 = vmatmul.mubr.msk.f32.gmra.mxu0 %vm248_vm1, %v1188_v3 }
  0xa5   :  { %2665 = vmatprep.mubr.msk.f32.mxu1 %vm2937_vm2, %v2936_v0  ;;  %2819 = vmatprep.mubr.msk.f32.mxu0 %vm2937_vm2, %v2936_v0 }
  0xa8   :  { %2666 = vmatmul.mubr.msk.f32.gmra.mxu1 %vm248_vm1, %v209_v42  ;;  %2820 = vmatmul.mubr.msk.f32.gmra.mxu0 %vm248_vm1, %v1189_v4 }
  0xa9   :  { %2668 = vmatprep.mubr.msk.f32.mxu1 %vm2937_vm2, %v2936_v0  ;;  %2822 = vmatprep.mubr.msk.f32.mxu0 %vm2937_vm2, %v2936_v0 }
  0xac   :  { %2669 = vmatmul.mubr.msk.f32.gmra.mxu1 %vm248_vm1, %v210_v6  ;;  %2823 = vmatmul.mubr.msk.f32.gmra.mxu0 %vm248_vm1, %v1190_v44 }
  0xad   :  { %2671 = vmatprep.mubr.msk.f32.mxu1 %vm2937_vm2, %v2936_v0  ;;  %2825 = vmatprep.mubr.msk.f32.mxu0 %vm2937_vm2, %v2936_v0 }
  0xb0   :  { %2672 = vmatmul.mubr.msk.f32.gmra.mxu1 %vm248_vm1, %v211_v9  ;;  %2826 = vmatmul.mubr.msk.f32.gmra.mxu0 %vm248_vm1, %v1191_v8  ;;  %v223_v9 = vld [vmem:[%s5267_s1 + $0xe8] sm:$0xff] }
  0xb1   :  { %2674 = vmatprep.mubr.msk.f32.mxu1 %vm2937_vm2, %v2936_v0  ;;  %2828 = vmatprep.mubr.msk.f32.mxu0 %vm2937_vm2, %v2936_v0  ;;  %v1204_v18 = vadd.f32 %v223_v9, %v3124_v22 }
  0xb4   :  { %2675 = vmatmul.mubr.msk.f32.gmra.mxu1 %vm248_vm1, %v212_v11  ;;  %2829 = vmatmul.mubr.msk.f32.gmra.mxu0 %vm248_vm1, %v1192_v48 }
  0xb5   :  { %2677 = vmatprep.mubr.msk.f32.mxu1 %vm2937_vm2, %v2936_v0  ;;  %2831 = vmatprep.mubr.msk.f32.mxu0 %vm2937_vm2, %v2936_v0 }
  0xb8   :  { %2678 = vmatmul.mubr.msk.f32.gmra.mxu1 %vm248_vm1, %v213_v50  ;;  %2832 = vmatmul.mubr.msk.f32.gmra.mxu0 %vm248_vm1, %v1193_v12 }
  0xb9   :  { %2680 = vmatprep.mubr.msk.f32.mxu1 %vm2937_vm2, %v2936_v0  ;;  %2834 = vmatprep.mubr.msk.f32.mxu0 %vm2937_vm2, %v2936_v0 }
  0xbc   :  { %2681 = vmatmul.mubr.msk.f32.gmra.mxu1 %vm248_vm1, %v214_v52  ;;  %2835 = vmatmul.mubr.msk.f32.gmra.mxu0 %vm248_vm1, %v1194_v13  ;;  %v224_v13 = vld [vmem:[%s5267_s1 + $0xf0] sm:$0xff] }
  0xbd   :  { %2683 = vmatprep.mubr.msk.f32.mxu1 %vm2937_vm2, %v2936_v0  ;;  %2837 = vmatprep.mubr.msk.f32.mxu0 %vm2937_vm2, %v2936_v0  ;;  %v1205_v22 = vadd.f32 %v224_v13, %v3150_v26 }
  0xc0   :  { %2684 = vmatmul.mubr.msk.f32.gmra.mxu1 %vm248_vm1, %v215_v54  ;;  %2838 = vmatmul.mubr.msk.f32.gmra.mxu0 %vm248_vm1, %v1195_v15 }
  0xc1   :  { %2686 = vmatprep.mubr.msk.f32.mxu1 %vm2937_vm2, %v2936_v0  ;;  %2840 = vmatprep.mubr.msk.f32.mxu0 %vm2937_vm2, %v2936_v0 }
  0xc4   :  { %2687 = vmatmul.mubr.msk.f32.gmra.mxu1 %vm248_vm1, %v216_v56  ;;  %2841 = vmatmul.mubr.msk.f32.gmra.mxu0 %vm248_vm1, %v1196_v16  ;;  %v225_v56 = vld [vmem:[%s5267_s1 + $0xf8] sm:$0xff] }
  0xc5   :  { %2689 = vmatprep.mubr.msk.f32.mxu1 %vm2937_vm2, %v2936_v0  ;;  %2843 = vmatprep.mubr.msk.f32.mxu0 %vm2937_vm2, %v2936_v0  ;;  %v1206_v26 = vadd.f32 %v225_v56, %v3172_v29  ;;  %v227_v29 = vld [vmem:[%s5267_s1 + $0x108] sm:$0xff] }
  0xc8   :  { %2690 = vmatmul.mubr.msk.f32.gmra.mxu1 %vm248_vm1, %v217_v58  ;;  %2844 = vmatmul.mubr.msk.f32.gmra.mxu0 %vm248_vm1, %v1197_v17 }
  0xc9   :  { %2692 = vmatprep.mubr.msk.f32.mxu1 %vm2937_vm2, %v2936_v0  ;;  %2846 = vmatprep.mubr.msk.f32.mxu0 %vm2937_vm2, %v2936_v0 }
  0xcc   :  { %v4135_v20 = vpop.f32.mrf.mxu0  ;;  %v4137_v21 = vpop.f32.mrf.mxu1  ;;  %2693 = vmatmul.mubr.msk.f32.gmra.mxu1 %vm248_vm1, %v218_v60  ;;  %2847 = vmatmul.mubr.msk.f32.gmra.mxu0 %vm248_vm1, %v1198_v19 }
  0xcd   :  { %2695 = vmatprep.mubr.msk.f32.mxu1 %vm2937_vm2, %v2936_v0  ;;  %2849 = vmatprep.mubr.msk.f32.mxu0 %vm2937_vm2, %v2936_v0 }
  0xce   :  { %v2465_v24 = vpop.f32.mrf.mxu0  ;;  %v2540_v25 = vpop.f32.mrf.mxu1 }
  0xd0   :  { %v4149_v27 = vpop.f32.mrf.mxu0  ;;  %v4151_v28 = vpop.f32.mrf.mxu1  ;;  %2696 = vmatmul.mubr.msk.f32.gmra.mxu1 %vm248_vm1, %v219_v23  ;;  %2850 = vmatmul.mubr.msk.f32.gmra.mxu0 %vm248_vm1, %v1199_v62  ;;  %v226_v62 = vld [vmem:[%s5267_s1 + $0x100] sm:$0xff] }
  0xd1   :  { %2698 = vmatprep.mubr.msk.f32.mxu1 %vm2937_vm2, %v2936_v0  ;;  %2852 = vmatprep.mubr.msk.f32.mxu0 %vm2937_vm2, %v2936_v0  ;;  %v1207_v25 = vadd.f32 %v226_v62, %v3190_v31 }
  0xd2   :  { %v2468_v32 = vpop.f32.mrf.mxu0  ;;  %v2543_v34 = vpop.f32.mrf.mxu1 }
  0xd3   :  { %v1208_v34 = vadd.f32 %v227_v29, %v3208_v33 }
  0xd4   :  { %v4163_v36 = vpop.f32.mrf.mxu0  ;;  %v4165_v1 = vpop.f32.mrf.mxu1  ;;  %2699 = vmatmul.mubr.msk.f32.gmra.mxu1 %vm248_vm1, %v220_v30  ;;  %2853 = vmatmul.mubr.msk.f32.gmra.mxu0 %vm248_vm1, %v1200_v2 }
  0xd5   :  { %2701 = vmatprep.mubr.msk.f32.mxu1 %vm2937_vm2, %v2936_v0  ;;  %2855 = vmatprep.mubr.msk.f32.mxu0 %vm2937_vm2, %v2936_v0 }
  0xd6   :  { %v2471_v3 = vpop.f32.mrf.mxu0  ;;  %v2546_v40 = vpop.f32.mrf.mxu1 }
  0xd7   :  { %v228_v3 = vld [vmem:[%s5267_s1 + $0x110] sm:$0xff] }
  0xd8   :  { %v4177_v4 = vpop.f32.mrf.mxu0  ;;  %v4179_v42 = vpop.f32.mrf.mxu1  ;;  %2702 = vmatmul.mubr.msk.f32.gmra.mxu1 %vm248_vm1, %v221_v38  ;;  %2856 = vmatmul.mubr.msk.f32.gmra.mxu0 %vm248_vm1, %v1201_v7 }
  0xd9   :  { %2704 = vmatprep.mubr.msk.f32.mxu1 %vm2937_vm2, %v2936_v0  ;;  %2858 = vmatprep.mubr.msk.f32.mxu0 %vm2937_vm2, %v2936_v0 }
  0xda   :  { %v2474_v44 = vpop.f32.mrf.mxu0  ;;  %v2549_v6 = vpop.f32.mrf.mxu1 }
  0xdb   :  { %v229_v6 = vld [vmem:[%s5267_s1 + $0x118] sm:$0xff] }
  0xdc   :  { %v4191_v8 = vpop.f32.mrf.mxu0  ;;  %v4193_v46 = vpop.f32.mrf.mxu1  ;;  %2705 = vmatmul.mubr.msk.f32.gmra.mxu1 %vm248_vm1, %v222_v5  ;;  %2859 = vmatmul.mubr.msk.f32.gmra.mxu0 %vm248_vm1, %v1202_v10  ;;  %v1209_v10 = vadd.f32 %v228_v3, %v3226_v35 }
  0xdd   :  { %2707 = vmatprep.mubr.msk.f32.mxu1 %vm2937_vm2, %v2936_v0  ;;  %2861 = vmatprep.mubr.msk.f32.mxu0 %vm2937_vm2, %v2936_v0 }
  0xde   :  { %v2477_v48 = vpop.f32.mrf.mxu0  ;;  %v2552_v11 = vpop.f32.mrf.mxu1 }
  0xe0   :  { %v4205_v12 = vpop.f32.mrf.mxu0  ;;  %v4207_v50 = vpop.f32.mrf.mxu1  ;;  %2708 = vmatmul.mubr.msk.f32.gmra.mxu1 %vm248_vm1, %v223_v9  ;;  %2862 = vmatmul.mubr.msk.f32.gmra.mxu0 %vm248_vm1, %v1203_v14  ;;  %v1210_v9 = vadd.f32 %v229_v6, %v3244_v37 }
  0xe1   :  { %2710 = vmatprep.mubr.msk.f32.mxu1 %vm2937_vm2, %v2936_v0  ;;  %2864 = vmatprep.mubr.msk.f32.mxu0 %vm2937_vm2, %v2936_v0 }
  0xe2   :  { %v2480_v52 = vpop.f32.mrf.mxu0  ;;  %v2555_v15 = vpop.f32.mrf.mxu1 }
  0xe4   :  { %v4219_v54 = vpop.f32.mrf.mxu0  ;;  %v4221_v16 = vpop.f32.mrf.mxu1  ;;  %2711 = vmatmul.mubr.msk.f32.gmra.mxu1 %vm248_vm1, %v224_v13  ;;  %2865 = vmatmul.mubr.msk.f32.gmra.mxu0 %vm248_vm1, %v1204_v18  ;;  %v230_v18 = vld [vmem:[%s5267_s1 + $0x120] sm:$0xff] }
  0xe5   :  { %2713 = vmatprep.mubr.msk.f32.mxu1 %vm2937_vm2, %v2936_v0  ;;  %2867 = vmatprep.mubr.msk.f32.mxu0 %vm2937_vm2, %v2936_v0  ;;  %v1211_v52 = vadd.f32 %v230_v18, %v3262_v39 }
  0xe6   :  { %v2483_v17 = vpop.f32.mrf.mxu0  ;;  %v2558_v58 = vpop.f32.mrf.mxu1 }
  0xe8   :  { %v4233_v19 = vpop.f32.mrf.mxu0  ;;  %v4235_v60 = vpop.f32.mrf.mxu1  ;;  %2714 = vmatmul.mubr.msk.f32.gmra.mxu1 %vm248_vm1, %v225_v56  ;;  %2868 = vmatmul.mubr.msk.f32.gmra.mxu0 %vm248_vm1, %v1205_v22  ;;  %v231_v56 = vld [vmem:[%s5267_s1 + $0x128] sm:$0xff] }
  0xe9   :  { %2716 = vmatprep.mubr.msk.f32.mxu1 %vm2937_vm2, %v2936_v0  ;;  %2870 = vmatprep.mubr.msk.f32.mxu0 %vm2937_vm2, %v2936_v0  ;;  %v1212_v58 = vadd.f32 %v231_v56, %v3280_v41 }
  0xea   :  { %v2486_v23 = vpop.f32.mrf.mxu0  ;;  %v2561_v24 = vpop.f32.mrf.mxu1 }
  0xeb   :  { %v232_v23 = vld [vmem:[%s5267_s1 + $0x130] sm:$0xff] }
  0xec   :  { %v4248_v2 = vpop.f32.mrf.mxu0  ;;  %v4250_v30 = vpop.f32.mrf.mxu1  ;;  %2717 = vmatmul.mubr.msk.f32.gmra.mxu1 %vm248_vm1, %v226_v62  ;;  %2871 = vmatmul.mubr.msk.f32.gmra.mxu0 %vm248_vm1, %v1206_v26 }
  0xed   :  { %2719 = vmatprep.mubr.msk.f32.mxu1 %vm2937_vm2, %v2936_v0  ;;  %2873 = vmatprep.mubr.msk.f32.mxu0 %vm2937_vm2, %v2936_v0 }
  0xee   :  { %v2489_v32 = vpop.f32.mrf.mxu0  ;;  %v2564_v31 = vpop.f32.mrf.mxu1 }
  0xef   :  { %v233_v31 = vld [vmem:[%s5267_s1 + $0x138] sm:$0xff] }
  0xf0   :  { %v4262_v7 = vpop.f32.mrf.mxu0  ;;  %v4264_v38 = vpop.f32.mrf.mxu1  ;;  %2720 = vmatmul.mubr.msk.f32.gmra.mxu1 %vm248_vm1, %v227_v29  ;;  %2874 = vmatmul.mubr.msk.f32.gmra.mxu0 %vm248_vm1, %v1207_v25  ;;  %v1213_v25 = vadd.f32 %v232_v23, %v3298_v43 }
  0xf1   :  { %2722 = vmatprep.mubr.msk.f32.mxu1 %vm2937_vm2, %v2936_v0  ;;  %2876 = vmatprep.mubr.msk.f32.mxu0 %vm2937_vm2, %v2936_v0 }
  0xf2   :  { %v2492_v40 = vpop.f32.mrf.mxu0  ;;  %v2567_v33 = vpop.f32.mrf.mxu1 }
  0xf4   :  { %v4276_v5 = vpop.f32.mrf.mxu0  ;;  %v4278_v44 = vpop.f32.mrf.mxu1  ;;  %2723 = vmatmul.mubr.msk.f32.gmra.mxu1 %vm248_vm1, %v228_v3  ;;  %2877 = vmatmul.mubr.msk.f32.gmra.mxu0 %vm248_vm1, %v1208_v34  ;;  %v1214_v3 = vadd.f32 %v233_v31, %v3316_v45 }
  0xf5   :  { %2725 = vmatprep.mubr.msk.f32.mxu1 %vm2937_vm2, %v2936_v0  ;;  %2879 = vmatprep.mubr.msk.f32.mxu0 %vm2937_vm2, %v2936_v0 }
  0xf6   :  { %v2495_v14 = vpop.f32.mrf.mxu0  ;;  %v2570_v35 = vpop.f32.mrf.mxu1 }
  0xf8   :  { %v4290_v48 = vpop.f32.mrf.mxu0  ;;  %v4292_v11 = vpop.f32.mrf.mxu1  ;;  %2726 = vmatmul.mubr.msk.f32.gmra.mxu1 %vm248_vm1, %v229_v6  ;;  %2880 = vmatmul.mubr.msk.f32.gmra.mxu0 %vm248_vm1, %v1209_v10  ;;  %v234_v10 = vld [vmem:[%s5267_s1 + $0x140] sm:$0xff] }
  0xf9   :  { %2728 = vmatprep.mubr.msk.f32.mxu1 %vm2937_vm2, %v2936_v0  ;;  %2882 = vmatprep.mubr.msk.f32.mxu0 %vm2937_vm2, %v2936_v0  ;;  %v1215_v14 = vadd.f32 %v234_v10, %v3334_v47 }
  0xfa   :  { %v2498_v13 = vpop.f32.mrf.mxu0  ;;  %v2573_v37 = vpop.f32.mrf.mxu1 }
  0xfc   :  { %v4304_v15 = vpop.f32.mrf.mxu0  ;;  %v4306_v22 = vpop.f32.mrf.mxu1  ;;  %2729 = vmatmul.mubr.msk.f32.gmra.mxu1 %vm248_vm1, %v230_v18  ;;  %2883 = vmatmul.mubr.msk.f32.gmra.mxu0 %vm248_vm1, %v1210_v9  ;;  %v235_v18 = vld [vmem:[%s5267_s1 + $0x148] sm:$0xff] }
  0xfd   :  { %2731 = vmatprep.mubr.msk.f32.mxu1 %vm2937_vm2, %v2936_v0  ;;  %2885 = vmatprep.mubr.msk.f32.mxu0 %vm2937_vm2, %v2936_v0  ;;  %v1216_v37 = vadd.f32 %v235_v18, %v3352_v49 }
  0xfe   :  { %v2501_v17 = vpop.f32.mrf.mxu0  ;;  %v2576_v39 = vpop.f32.mrf.mxu1 }
  0xff   :  { %v236_v17 = vld [vmem:[%s5267_s1 + $0x150] sm:$0xff] }
 0x100   :  { %v4318_v26 = vpop.f32.mrf.mxu0  ;;  %v4320_v62 = vpop.f32.mrf.mxu1  ;;  %2732 = vmatmul.mubr.msk.f32.gmra.mxu1 %vm248_vm1, %v231_v56  ;;  %2886 = vmatmul.mubr.msk.f32.gmra.mxu0 %vm248_vm1, %v1211_v52 }
 0x101   :  { %2734 = vmatprep.mubr.msk.f32.mxu1 %vm2937_vm2, %v2936_v0  ;;  %2888 = vmatprep.mubr.msk.f32.mxu0 %vm2937_vm2, %v2936_v0 }
 0x102   :  { %v2504_v24 = vpop.f32.mrf.mxu0  ;;  %v2579_v41 = vpop.f32.mrf.mxu1 }
 0x103   :  { %v237_v41 = vld [vmem:[%s5267_s1 + $0x158] sm:$0xff] }
 0x104   :  { %v4332_v29 = vpop.f32.mrf.mxu0  ;;  %v4334_v32 = vpop.f32.mrf.mxu1  ;;  %2735 = vmatmul.mubr.msk.f32.gmra.mxu1 %vm248_vm1, %v232_v23  ;;  %2889 = vmatmul.mubr.msk.f32.gmra.mxu0 %vm248_vm1, %v1212_v58  ;;  %v1217_v58 = vadd.f32 %v236_v17, %v3370_v51 }
 0x105   :  { %2737 = vmatprep.mubr.msk.f32.mxu1 %vm2937_vm2, %v2936_v0  ;;  %2891 = vmatprep.mubr.msk.f32.mxu0 %vm2937_vm2, %v2936_v0 }
 0x106   :  { %v2507_v34 = vpop.f32.mrf.mxu0  ;;  %v2582_v43 = vpop.f32.mrf.mxu1 }
 0x108   :  { %v4346_v40 = vpop.f32.mrf.mxu0  ;;  %v4348_v33 = vpop.f32.mrf.mxu1  ;;  %2738 = vmatmul.mubr.msk.f32.gmra.mxu1 %vm248_vm1, %v233_v31  ;;  %2892 = vmatmul.mubr.msk.f32.gmra.mxu0 %vm248_vm1, %v1213_v25  ;;  %v1218_v31 = vadd.f32 %v237_v41, %v3388_v53 }
 0x109   :  { %2740 = vmatprep.mubr.msk.f32.mxu1 %vm2937_vm2, %v2936_v0  ;;  %2894 = vmatprep.mubr.msk.f32.mxu0 %vm2937_vm2, %v2936_v0 }
 0x10a   :  { %v2510_v6 = vpop.f32.mrf.mxu0  ;;  %v2585_v45 = vpop.f32.mrf.mxu1 }
 0x10c   :  { %v4360_v35 = vpop.f32.mrf.mxu0  ;;  %v4362_v9 = vpop.f32.mrf.mxu1  ;;  %2741 = vmatmul.mubr.msk.f32.gmra.mxu1 %vm248_vm1, %v234_v10  ;;  %2895 = vmatmul.mubr.msk.f32.gmra.mxu0 %vm248_vm1, %v1214_v3  ;;  %v238_v3 = vld [vmem:[%s5267_s1 + $0x160] sm:$0xff] }
 0x10d   :  { %2743 = vmatprep.mubr.msk.f32.mxu1 %vm2937_vm2, %v2936_v0  ;;  %2897 = vmatprep.mubr.msk.f32.mxu0 %vm2937_vm2, %v2936_v0  ;;  %v1219_v6 = vadd.f32 %v238_v3, %v3406_v55 }
 0x10e   :  { %v2513_v13 = vpop.f32.mrf.mxu0  ;;  %v2588_v47 = vpop.f32.mrf.mxu1 }
 0x110   :  { %v4374_v52 = vpop.f32.mrf.mxu0  ;;  %v4376_v56 = vpop.f32.mrf.mxu1  ;;  %2744 = vmatmul.mubr.msk.f32.gmra.mxu1 %vm248_vm1, %v235_v18  ;;  %2898 = vmatmul.mubr.msk.f32.gmra.mxu0 %vm248_vm1, %v1215_v14  ;;  %v239_v18 = vld [vmem:[%s5267_s1 + $0x168] sm:$0xff] }
 0x111   :  { %2746 = vmatprep.mubr.msk.f32.mxu1 %vm2937_vm2, %v2936_v0  ;;  %2900 = vmatprep.mubr.msk.f32.mxu0 %vm2937_vm2, %v2936_v0  ;;  %v1220_v47 = vadd.f32 %v239_v18, %v3424_v57 }
 0x112   :  { %v2516_v39 = vpop.f32.mrf.mxu0  ;;  %v2591_v49 = vpop.f32.mrf.mxu1 }
 0x113   :  { %v240_v39 = vld [vmem:[%s5267_s1 + $0x170] sm:$0xff] }
 0x114   :  { %v4388_v23 = vpop.f32.mrf.mxu0  ;;  %v4390_v24 = vpop.f32.mrf.mxu1  ;;  %2747 = vmatmul.mubr.msk.f32.gmra.mxu1 %vm248_vm1, %v236_v17  ;;  %2901 = vmatmul.mubr.msk.f32.gmra.mxu0 %vm248_vm1, %v1216_v37 }
 0x115   :  { %2749 = vmatprep.mubr.msk.f32.mxu1 %vm2937_vm2, %v2936_v0  ;;  %2903 = vmatprep.mubr.msk.f32.mxu0 %vm2937_vm2, %v2936_v0 }
 0x116   :  { %v2519_v25 = vpop.f32.mrf.mxu0  ;;  %v2594_v51 = vpop.f32.mrf.mxu1 }
 0x117   :  { %v241_v51 = vld [vmem:[%s5267_s1 + $0x178] sm:$0xff] }
 0x118   :  { %v4402_v34 = vpop.f32.mrf.mxu0  ;;  %v4404_v43 = vpop.f32.mrf.mxu1  ;;  %2750 = vmatmul.mubr.msk.f32.gmra.mxu1 %vm248_vm1, %v237_v41  ;;  %2904 = vmatmul.mubr.msk.f32.gmra.mxu0 %vm248_vm1, %v1217_v58  ;;  %v1221_v58 = vadd.f32 %v240_v39, %v3442_v59 }
 0x119   :  { %2752 = vmatprep.mubr.msk.f32.mxu1 %vm2937_vm2, %v2936_v0  ;;  %2906 = vmatprep.mubr.msk.f32.mxu0 %vm2937_vm2, %v2936_v0 }
 0x11a   :  { %v2522_v10 = vpop.f32.mrf.mxu0  ;;  %v2597_v53 = vpop.f32.mrf.mxu1 }
 0x11c   :  { %v4416_v45 = vpop.f32.mrf.mxu0  ;;  %v4418_v14 = vpop.f32.mrf.mxu1  ;;  %2753 = vmatmul.mubr.msk.f32.gmra.mxu1 %vm248_vm1, %v238_v3  ;;  %2907 = vmatmul.mubr.msk.f32.gmra.mxu0 %vm248_vm1, %v1218_v31  ;;  %v1222_v3 = vadd.f32 %v241_v51, %v3460_v61 }
 0x11d   :  { %2755 = vmatprep.mubr.msk.f32.mxu1 %vm2937_vm2, %v2936_v0  ;;  %2909 = vmatprep.mubr.msk.f32.mxu0 %vm2937_vm2, %v2936_v0 }
 0x11e   :  { %v2525_v13 = vpop.f32.mrf.mxu0  ;;  %v2600_v55 = vpop.f32.mrf.mxu1 }
 0x120   :  { %v4430_v37 = vpop.f32.mrf.mxu0  ;;  %v4432_v17 = vpop.f32.mrf.mxu1  ;;  %2756 = vmatmul.mubr.msk.f32.gmra.mxu1 %vm248_vm1, %v239_v18  ;;  %2910 = vmatmul.mubr.msk.f32.gmra.mxu0 %vm248_vm1, %v1219_v6  ;;  %v242_v6 = vld [vmem:[%s5267_s1 + $0x180] sm:$0xff] }
 0x121   :  { %2758 = vmatprep.mubr.msk.f32.mxu1 %vm2937_vm2, %v2936_v0  ;;  %2912 = vmatprep.mubr.msk.f32.mxu0 %vm2937_vm2, %v2936_v0  ;;  %v1223_v13 = vadd.f32 %v242_v6, %v3478_v63 }
 0x122   :  { %v2528_v49 = vpop.f32.mrf.mxu0  ;;  %v2603_v57 = vpop.f32.mrf.mxu1 }
 0x124   :  { %v4444_v41 = vpop.f32.mrf.mxu0  ;;  %v4446_v25 = vpop.f32.mrf.mxu1  ;;  %2759 = vmatmul.mubr.msk.f32.gmra.mxu1 %vm248_vm1, %v240_v39  ;;  %2913 = vmatmul.mubr.msk.f32.gmra.mxu0 %vm248_vm1, %v1220_v47  ;;  %v1689_v39 = vld [vmem:[%s5269_s7] sm:$0xff] }
 0x125   :  { %2761 = vmatprep.mubr.msk.f32.mxu1 %vm2937_vm2, %v2936_v0  ;;  %2915 = vmatprep.mubr.msk.f32.mxu0 %vm2937_vm2, %v2936_v0 }
 0x126   :  { %v2531_v31 = vpop.f32.mrf.mxu0  ;;  %v2606_v59 = vpop.f32.mrf.mxu1 }
 0x127   :  { %v1690_v31 = vld [vmem:[%s5269_s7 + $0x8] sm:$0xff] }
 0x128   :  { %v4458_v10 = vpop.f32.mrf.mxu0  ;;  %v4460_v53 = vpop.f32.mrf.mxu1  ;;  %2762 = vmatmul.mubr.msk.f32.gmra.mxu1 %vm248_vm1, %v241_v51  ;;  %2916 = vmatmul.mubr.msk.f32.gmra.mxu0 %vm248_vm1, %v1221_v58 }
 0x129   :  { %2764 = vmatprep.mubr.msk.f32.mxu1 %vm2937_vm2, %v2936_v0  ;;  %2918 = vmatprep.mubr.msk.f32.mxu0 %vm2937_vm2, %v2936_v0 }
 0x12a   :  { %v2534_v18 = vpop.f32.mrf.mxu0  ;;  %v2609_v61 = vpop.f32.mrf.mxu1 }
 0x12c   :  { %v4472_v55 = vpop.f32.mrf.mxu0  ;;  %v931_v47 = vpop.f32.mrf.mxu1  ;;  %2765 = vmatmul.mubr.msk.f32.gmra.mxu1 %vm248_vm1, %v242_v6  ;;  %2919 = vmatmul.mubr.msk.f32.gmra.mxu0 %vm248_vm1, %v1222_v3  ;;  %v1886_v6 = vld [vmem:[%s5271_s8] sm:$0xff] }
 0x12d   :  { %v1738_v49 = vsub.f32 %v4135_v20, %v931_v47  ;;  %2921 = vmatprep.mubr.msk.f32.mxu0 %vm2937_vm2, %v2936_v0 }
 0x12e   :  { %v2537_v57 = vpop.f32.mrf.mxu0  ;;  %v2622_v58 = vpop.f32.mrf.mxu1 }
 0x12f   :  { %v1787_v51 = vadd.f32 %v1738_v49, %v1689_v39 }
 0x130   :  { %v936_v63 = vpop.f32.mrf.mxu1  ;;  %v1445_v59 = vpop.f32.mrf.mxu0  ;;  %2922 = vmatmul.mubr.msk.f32.gmra.mxu0 %vm248_vm1, %v1223_v13  ;;  %v1691_v13 = vld [vmem:[%s5269_s7 + $0x10] sm:$0xff] }
 0x131   :  { %1837 = vst.msk [vmem:[%s5269_s7] sm:$0xff] %vm39_vm3, %v1787_v51  ;;  %v1739_v3 = vsub.f32 %v4149_v27, %v936_v63  ;;  %v1935_v0 = vsub.f32 %v1445_v59, %v4135_v20 }
 0x132   :  { %v2625_v18 = vpop.f32.mrf.mxu1  ;;  %v2779_v61 = vpop.f32.mrf.mxu0 }
 0x133   :  { %v1788_v39 = vadd.f32 %v1739_v3, %v1690_v31  ;;  %v1984_v49 = vsub.f32 %v1935_v0, %v931_v47  ;;  %v1887_v47 = vld [vmem:[%s5271_s8 + $0x8] sm:$0xff] }
 0x134   :  { %v941_v57 = vpop.f32.mrf.mxu1  ;;  %v1450_v58 = vpop.f32.mrf.mxu0 }
 0x135   :  { %1838 = vst.msk [vmem:[%s5269_s7 + $0x8] sm:$0xff] %vm39_vm3, %v1788_v39  ;;  %v2033_v20 = vadd.f32 %v1984_v49, %v1886_v6  ;;  %v1740_v51 = vsub.f32 %v4163_v36, %v941_v57  ;;  %v1936_v59 = vsub.f32 %v1450_v58, %v4149_v27  ;;  %v1692_v6 = vld [vmem:[%s5269_s7 + $0x18] sm:$0xff] }
 0x136   :  { %v2628_v31 = vpop.f32.mrf.mxu1  ;;  %v2782_v3 = vpop.f32.mrf.mxu0 }
 0x137   :  { %2082 = vst.msk [vmem:[%s5271_s8] sm:$0xff] %vm39_vm3, %v2033_v20  ;;  %v1789_v0 = vadd.f32 %v1740_v51, %v1691_v13  ;;  %v1985_v18 = vsub.f32 %v1936_v59, %v936_v63  ;;  %v1888_v63 = vld [vmem:[%s5271_s8 + $0x10] sm:$0xff] }
 0x138   :  { %v946_v61 = vpop.f32.mrf.mxu1  ;;  %v1455_v39 = vpop.f32.mrf.mxu0 }
 0x139   :  { %1839 = vst.msk [vmem:[%s5269_s7 + $0x10] sm:$0xff] %vm39_vm3, %v1789_v0  ;;  %v2034_v27 = vadd.f32 %v1985_v18, %v1887_v47  ;;  %v1741_v49 = vsub.f32 %v4177_v4, %v946_v61  ;;  %v1937_v58 = vsub.f32 %v1455_v39, %v4163_v36  ;;  %v1693_v47 = vld [vmem:[%s5269_s7 + $0x20] sm:$0xff] }
 0x13a   :  { %v2631_v13 = vpop.f32.mrf.mxu1  ;;  %v2785_v20 = vpop.f32.mrf.mxu0 }
 0x13b   :  { %2083 = vst.msk [vmem:[%s5271_s8 + $0x8] sm:$0xff] %vm39_vm3, %v2034_v27  ;;  %v1790_v51 = vadd.f32 %v1741_v49, %v1692_v6  ;;  %v1986_v59 = vsub.f32 %v1937_v58, %v941_v57  ;;  %v1889_v57 = vld [vmem:[%s5271_s8 + $0x18] sm:$0xff] }
 0x13c   :  { %v951_v31 = vpop.f32.mrf.mxu1  ;;  %v1460_v3 = vpop.f32.mrf.mxu0 }
 0x13d   :  { %1840 = vst.msk [vmem:[%s5269_s7 + $0x18] sm:$0xff] %vm39_vm3, %v1790_v51  ;;  %v2035_v36 = vadd.f32 %v1986_v59, %v1888_v63  ;;  %v1742_v0 = vsub.f32 %v4191_v8, %v951_v31  ;;  %v1938_v18 = vsub.f32 %v1460_v3, %v4177_v4  ;;  %v1694_v63 = vld [vmem:[%s5269_s7 + $0x28] sm:$0xff] }
 0x13e   :  { %v2634_v6 = vpop.f32.mrf.mxu1  ;;  %v2788_v39 = vpop.f32.mrf.mxu0 }
 0x13f   :  { %2084 = vst.msk [vmem:[%s5271_s8 + $0x10] sm:$0xff] %vm39_vm3, %v2035_v36  ;;  %v1791_v27 = vadd.f32 %v1742_v0, %v1693_v47  ;;  %v1987_v49 = vsub.f32 %v1938_v18, %v946_v61  ;;  %v1890_v61 = vld [vmem:[%s5271_s8 + $0x20] sm:$0xff]  ;;  %v1695_v18 = vld [vmem:[%s5269_s7 + $0x30] sm:$0xff] }
 0x140   :  { %v956_v58 = vpop.f32.mrf.mxu1  ;;  %v1465_v13 = vpop.f32.mrf.mxu0 }
 0x141   :  { %1841 = vst.msk [vmem:[%s5269_s7 + $0x20] sm:$0xff] %vm39_vm3, %v1791_v27  ;;  %v2036_v4 = vadd.f32 %v1987_v49, %v1889_v57  ;;  %v1743_v20 = vsub.f32 %v4205_v12, %v956_v58  ;;  %v1939_v51 = vsub.f32 %v1465_v13, %v4191_v8 }
 0x142   :  { %v2637_v59 = vpop.f32.mrf.mxu1  ;;  %v2791_v47 = vpop.f32.mrf.mxu0 }
 0x143   :  { %2085 = vst.msk [vmem:[%s5271_s8 + $0x18] sm:$0xff] %vm39_vm3, %v2036_v4  ;;  %v1792_v3 = vadd.f32 %v1743_v20, %v1694_v63  ;;  %v1988_v36 = vsub.f32 %v1939_v51, %v951_v31  ;;  %v1891_v31 = vld [vmem:[%s5271_s8 + $0x28] sm:$0xff]  ;;  %v1696_v20 = vld [vmem:[%s5269_s7 + $0x38] sm:$0xff] }
 0x144   :  { %v961_v0 = vpop.f32.mrf.mxu1  ;;  %v1470_v57 = vpop.f32.mrf.mxu0 }
 0x145   :  { %1842 = vst.msk [vmem:[%s5269_s7 + $0x28] sm:$0xff] %vm39_vm3, %v1792_v3  ;;  %v2037_v8 = vadd.f32 %v1988_v36, %v1890_v61  ;;  %v1744_v6 = vsub.f32 %v4219_v54, %v961_v0  ;;  %v1940_v39 = vsub.f32 %v1470_v57, %v4205_v12 }
 0x146   :  { %v2640_v27 = vpop.f32.mrf.mxu1  ;;  %v2794_v49 = vpop.f32.mrf.mxu0 }
 0x147   :  { %2086 = vst.msk [vmem:[%s5271_s8 + $0x20] sm:$0xff] %vm39_vm3, %v2037_v8  ;;  %v1793_v63 = vadd.f32 %v1744_v6, %v1695_v18  ;;  %v1989_v13 = vsub.f32 %v1940_v39, %v956_v58  ;;  %v1892_v58 = vld [vmem:[%s5271_s8 + $0x30] sm:$0xff]  ;;  %v1697_v8 = vld [vmem:[%s5269_s7 + $0x40] sm:$0xff] }
 0x148   :  { %v966_v4 = vpop.f32.mrf.mxu1  ;;  %v1475_v51 = vpop.f32.mrf.mxu0 }
 0x149   :  { %1843 = vst.msk [vmem:[%s5269_s7 + $0x30] sm:$0xff] %vm39_vm3, %v1793_v63  ;;  %v2038_v12 = vadd.f32 %v1989_v13, %v1891_v31  ;;  %v1745_v61 = vsub.f32 %v4233_v19, %v966_v4  ;;  %v1941_v59 = vsub.f32 %v1475_v51, %v4219_v54  ;;  %v1698_v51 = vld [vmem:[%s5269_s7 + $0x48] sm:$0xff] }
 0x14a   :  { %v2643_v47 = vpop.f32.mrf.mxu1  ;;  %v2797_v3 = vpop.f32.mrf.mxu0 }
 0x14b   :  { %2087 = vst.msk [vmem:[%s5271_s8 + $0x28] sm:$0xff] %vm39_vm3, %v2038_v12  ;;  %v1794_v36 = vadd.f32 %v1745_v61, %v1696_v20  ;;  %v1990_v18 = vsub.f32 %v1941_v59, %v961_v0  ;;  %v1893_v0 = vld [vmem:[%s5271_s8 + $0x38] sm:$0xff] }
 0x14c   :  { %v971_v57 = vpop.f32.mrf.mxu1  ;;  %v1480_v6 = vpop.f32.mrf.mxu0 }
 0x14d   :  { %1844 = vst.msk [vmem:[%s5269_s7 + $0x38] sm:$0xff] %vm39_vm3, %v1794_v36  ;;  %v2039_v54 = vadd.f32 %v1990_v18, %v1892_v58  ;;  %v1746_v39 = vsub.f32 %v4248_v2, %v971_v57  ;;  %v1942_v31 = vsub.f32 %v1480_v6, %v4233_v19 }
 0x14e   :  { %v2646_v27 = vpop.f32.mrf.mxu1  ;;  %v2800_v49 = vpop.f32.mrf.mxu0 }
 0x14f   :  { %2088 = vst.msk [vmem:[%s5271_s8 + $0x30] sm:$0xff] %vm39_vm3, %v2039_v54  ;;  %v1795_v63 = vadd.f32 %v1746_v39, %v1697_v8  ;;  %v1991_v13 = vsub.f32 %v1942_v31, %v966_v4  ;;  %v1894_v4 = vld [vmem:[%s5271_s8 + $0x40] sm:$0xff]  ;;  %v1699_v8 = vld [vmem:[%s5269_s7 + $0x50] sm:$0xff] }
 0x150   :  { %v976_v20 = vpop.f32.mrf.mxu1  ;;  %v1485_v12 = vpop.f32.mrf.mxu0 }
 0x151   :  { %1845 = vst.msk [vmem:[%s5269_s7 + $0x40] sm:$0xff] %vm39_vm3, %v1795_v63  ;;  %v2040_v19 = vadd.f32 %v1991_v13, %v1893_v0  ;;  %v1747_v61 = vsub.f32 %v4262_v7, %v976_v20  ;;  %v1943_v59 = vsub.f32 %v1485_v12, %v4248_v2  ;;  %v1700_v13 = vld [vmem:[%s5269_s7 + $0x58] sm:$0xff] }
 0x152   :  { %v2649_v58 = vpop.f32.mrf.mxu1  ;;  %v2803_v47 = vpop.f32.mrf.mxu0 }
 0x153   :  { %2089 = vst.msk [vmem:[%s5271_s8 + $0x38] sm:$0xff] %vm39_vm3, %v2040_v19  ;;  %v1796_v3 = vadd.f32 %v1747_v61, %v1698_v51  ;;  %v1992_v36 = vsub.f32 %v1943_v59, %v971_v57  ;;  %v1895_v57 = vld [vmem:[%s5271_s8 + $0x48] sm:$0xff] }
 0x154   :  { %v981_v18 = vpop.f32.mrf.mxu1  ;;  %v1490_v6 = vpop.f32.mrf.mxu0 }
 0x155   :  { %1846 = vst.msk [vmem:[%s5269_s7 + $0x48] sm:$0xff] %vm39_vm3, %v1796_v3  ;;  %v2041_v2 = vadd.f32 %v1992_v36, %v1894_v4  ;;  %v1748_v54 = vsub.f32 %v4276_v5, %v981_v18  ;;  %v1944_v39 = vsub.f32 %v1490_v6, %v4262_v7  ;;  %v1701_v3 = vld [vmem:[%s5269_s7 + $0x60] sm:$0xff] }
 0x156   :  { %v2652_v31 = vpop.f32.mrf.mxu1  ;;  %v2806_v0 = vpop.f32.mrf.mxu0 }
 0x157   :  { %2090 = vst.msk [vmem:[%s5271_s8 + $0x40] sm:$0xff] %vm39_vm3, %v2041_v2  ;;  %v1797_v27 = vadd.f32 %v1748_v54, %v1699_v8  ;;  %v1993_v49 = vsub.f32 %v1944_v39, %v976_v20  ;;  %v1896_v20 = vld [vmem:[%s5271_s8 + $0x50] sm:$0xff]  ;;  %v1702_v0 = vld [vmem:[%s5269_s7 + $0x68] sm:$0xff] }
 0x158   :  { %v986_v63 = vpop.f32.mrf.mxu1  ;;  %v1495_v51 = vpop.f32.mrf.mxu0 }
 0x159   :  { %1847 = vst.msk [vmem:[%s5269_s7 + $0x50] sm:$0xff] %vm39_vm3, %v1797_v27  ;;  %v2042_v7 = vadd.f32 %v1993_v49, %v1895_v57  ;;  %v1749_v12 = vsub.f32 %v4290_v48, %v986_v63  ;;  %v1945_v19 = vsub.f32 %v1495_v51, %v4276_v5 }
 0x15a   :  { %v2655_v61 = vpop.f32.mrf.mxu1  ;;  %v2809_v59 = vpop.f32.mrf.mxu0 }
 0x15b   :  { %2091 = vst.msk [vmem:[%s5271_s8 + $0x48] sm:$0xff] %vm39_vm3, %v2042_v7  ;;  %v1798_v4 = vadd.f32 %v1749_v12, %v1700_v13  ;;  %v1994_v58 = vsub.f32 %v1945_v19, %v981_v18  ;;  %v1897_v18 = vld [vmem:[%s5271_s8 + $0x58] sm:$0xff]  ;;  %v1703_v61 = vld [vmem:[%s5269_s7 + $0x70] sm:$0xff] }
 0x15c   :  { %v991_v47 = vpop.f32.mrf.mxu1  ;;  %v1500_v36 = vpop.f32.mrf.mxu0 }
 0x15d   :  { %1848 = vst.msk [vmem:[%s5269_s7 + $0x58] sm:$0xff] %vm39_vm3, %v1798_v4  ;;  %v2043_v5 = vadd.f32 %v1994_v58, %v1896_v20  ;;  %v1750_v8 = vsub.f32 %v4304_v15, %v991_v47  ;;  %v1946_v6 = vsub.f32 %v1500_v36, %v4290_v48 }
 0x15e   :  { %v2658_v2 = vpop.f32.mrf.mxu1  ;;  %v2812_v54 = vpop.f32.mrf.mxu0 }
 0x15f   :  { %2092 = vst.msk [vmem:[%s5271_s8 + $0x50] sm:$0xff] %vm39_vm3, %v2043_v5  ;;  %v1799_v39 = vadd.f32 %v1750_v8, %v1701_v3  ;;  %v1995_v57 = vsub.f32 %v1946_v6, %v986_v63  ;;  %v1898_v63 = vld [vmem:[%s5271_s8 + $0x60] sm:$0xff] }
 0x160   :  { %v996_v31 = vpop.f32.mrf.mxu1  ;;  %v1505_v27 = vpop.f32.mrf.mxu0 }
 0x161   :  { %1849 = vst.msk [vmem:[%s5269_s7 + $0x60] sm:$0xff] %vm39_vm3, %v1799_v39  ;;  %v2044_v48 = vadd.f32 %v1995_v57, %v1897_v18  ;;  %v1751_v49 = vsub.f32 %v4318_v26, %v996_v31  ;;  %v1947_v13 = vsub.f32 %v1505_v27, %v4304_v15  ;;  %v1704_v18 = vld [vmem:[%s5269_s7 + $0x78] sm:$0xff]  ;;  %v1900_v57 = vld [vmem:[%s5271_s8 + $0x70] sm:$0xff] }
 0x162   :  { %v2661_v51 = vpop.f32.mrf.mxu1  ;;  %v2815_v7 = vpop.f32.mrf.mxu0 }
 0x163   :  { %2093 = vst.msk [vmem:[%s5271_s8 + $0x58] sm:$0xff] %vm39_vm3, %v2044_v48  ;;  %v1800_v12 = vadd.f32 %v1751_v49, %v1702_v0  ;;  %v1996_v19 = vsub.f32 %v1947_v13, %v991_v47  ;;  %v1899_v47 = vld [vmem:[%s5271_s8 + $0x68] sm:$0xff]  ;;  %v1705_v13 = vld [vmem:[%s5269_s7 + $0x80] sm:$0xff] }
 0x164   :  { %v1001_v20 = vpop.f32.mrf.mxu1  ;;  %v1510_v59 = vpop.f32.mrf.mxu0 }
 0x165   :  { %1850 = vst.msk [vmem:[%s5269_s7 + $0x68] sm:$0xff] %vm39_vm3, %v1800_v12  ;;  %v2045_v15 = vadd.f32 %v1996_v19, %v1898_v63  ;;  %v1752_v4 = vsub.f32 %v4332_v29, %v1001_v20  ;;  %v1948_v58 = vsub.f32 %v1510_v59, %v4318_v26  ;;  %v1901_v12 = vld [vmem:[%s5271_s8 + $0x78] sm:$0xff] }
 0x166   :  { %v2664_v3 = vpop.f32.mrf.mxu1  ;;  %v2818_v36 = vpop.f32.mrf.mxu0 }
 0x167   :  { %2094 = vst.msk [vmem:[%s5271_s8 + $0x60] sm:$0xff] %vm39_vm3, %v2045_v15  ;;  %v1801_v5 = vadd.f32 %v1752_v4, %v1703_v61  ;;  %v1997_v8 = vsub.f32 %v1948_v58, %v996_v31  ;;  %v1706_v4 = vld [vmem:[%s5269_s7 + $0x88] sm:$0xff]  ;;  %v1902_v36 = vld [vmem:[%s5271_s8 + $0x80] sm:$0xff] }
 0x168   :  { %v1006_v6 = vpop.f32.mrf.mxu1  ;;  %v1515_v2 = vpop.f32.mrf.mxu0 }
 0x169   :  { %1851 = vst.msk [vmem:[%s5269_s7 + $0x70] sm:$0xff] %vm39_vm3, %v1801_v5  ;;  %v2046_v26 = vadd.f32 %v1997_v8, %v1899_v47  ;;  %v1753_v54 = vsub.f32 %v4346_v40, %v1006_v6  ;;  %v1949_v39 = vsub.f32 %v1515_v2, %v4332_v29 }
 0x16a   :  { %v2667_v31 = vpop.f32.mrf.mxu1  ;;  %v2821_v0 = vpop.f32.mrf.mxu0 }
 0x16b   :  { %2095 = vst.msk [vmem:[%s5271_s8 + $0x68] sm:$0xff] %vm39_vm3, %v2046_v26  ;;  %v1802_v27 = vadd.f32 %v1753_v54, %v1704_v18  ;;  %v1998_v48 = vsub.f32 %v1949_v39, %v1001_v20  ;;  %v1707_v26 = vld [vmem:[%s5269_s7 + $0x90] sm:$0xff]  ;;  %v1903_v31 = vld [vmem:[%s5271_s8 + $0x88] sm:$0xff] }
 0x16c   :  { %v1011_v49 = vpop.f32.mrf.mxu1  ;;  %v1520_v63 = vpop.f32.mrf.mxu0 }
 0x16d   :  { %1852 = vst.msk [vmem:[%s5269_s7 + $0x78] sm:$0xff] %vm39_vm3, %v1802_v27  ;;  %v2047_v29 = vadd.f32 %v1998_v48, %v1900_v57  ;;  %v1754_v51 = vsub.f32 %v4360_v35, %v1011_v49  ;;  %v1950_v7 = vsub.f32 %v1520_v63, %v4346_v40  ;;  %v1708_v63 = vld [vmem:[%s5269_s7 + $0x98] sm:$0xff] }
 0x16e   :  { %v2670_v19 = vpop.f32.mrf.mxu1  ;;  %v2824_v20 = vpop.f32.mrf.mxu0 }
 0x16f   :  { %2096 = vst.msk [vmem:[%s5271_s8 + $0x70] sm:$0xff] %vm39_vm3, %v2047_v29  ;;  %v1803_v61 = vadd.f32 %v1754_v51, %v1705_v13  ;;  %v1999_v59 = vsub.f32 %v1950_v7, %v1006_v6 }
 0x170   :  { %v1016_v15 = vpop.f32.mrf.mxu1  ;;  %v1525_v58 = vpop.f32.mrf.mxu0 }
 0x171   :  { %1853 = vst.msk [vmem:[%s5269_s7 + $0x80] sm:$0xff] %vm39_vm3, %v1803_v61  ;;  %v2048_v40 = vadd.f32 %v1999_v59, %v1901_v12  ;;  %v1755_v47 = vsub.f32 %v4374_v52, %v1016_v15  ;;  %v1951_v3 = vsub.f32 %v1525_v58, %v4360_v35  ;;  %v1904_v12 = vld [vmem:[%s5271_s8 + $0x90] sm:$0xff] }
 0x172   :  { %v2673_v5 = vpop.f32.mrf.mxu1  ;;  %v2827_v8 = vpop.f32.mrf.mxu0 }
 0x173   :  { %2097 = vst.msk [vmem:[%s5271_s8 + $0x78] sm:$0xff] %vm39_vm3, %v2048_v40  ;;  %v1804_v6 = vadd.f32 %v1755_v47, %v1706_v4  ;;  %v2000_v18 = vsub.f32 %v1951_v3, %v1011_v49  ;;  %v1709_v4 = vld [vmem:[%s5269_s7 + $0xa0] sm:$0xff]  ;;  %v1905_v3 = vld [vmem:[%s5271_s8 + $0x98] sm:$0xff] }
 0x174   :  { %v1021_v2 = vpop.f32.mrf.mxu1  ;;  %v1530_v54 = vpop.f32.mrf.mxu0 }
 0x175   :  { %1854 = vst.msk [vmem:[%s5269_s7 + $0x88] sm:$0xff] %vm39_vm3, %v1804_v6  ;;  %v2049_v35 = vadd.f32 %v2000_v18, %v1902_v36  ;;  %v1756_v39 = vsub.f32 %v4388_v23, %v1021_v2  ;;  %v1952_v57 = vsub.f32 %v1530_v54, %v4374_v52 }
 0x176   :  { %v2676_v0 = vpop.f32.mrf.mxu1  ;;  %v2830_v27 = vpop.f32.mrf.mxu0 }
 0x177   :  { %2098 = vst.msk [vmem:[%s5271_s8 + $0x80] sm:$0xff] %vm39_vm3, %v2049_v35  ;;  %v1805_v48 = vadd.f32 %v1756_v39, %v1707_v26  ;;  %v2001_v49 = vsub.f32 %v1952_v57, %v1016_v15  ;;  %v1906_v39 = vld [vmem:[%s5271_s8 + $0xa0] sm:$0xff] }
 0x178   :  { %v1026_v13 = vpop.f32.mrf.mxu1  ;;  %v1535_v29 = vpop.f32.mrf.mxu0 }
 0x179   :  { %1855 = vst.msk [vmem:[%s5269_s7 + $0x90] sm:$0xff] %vm39_vm3, %v1805_v48  ;;  %v2050_v52 = vadd.f32 %v2001_v49, %v1903_v31  ;;  %v1757_v51 = vsub.f32 %v4402_v34, %v1026_v13  ;;  %v1953_v7 = vsub.f32 %v1535_v29, %v4388_v23  ;;  %v1711_v49 = vld [vmem:[%s5269_s7 + $0xb0] sm:$0xff] }
 0x17a   :  { %v2679_v19 = vpop.f32.mrf.mxu1  ;;  %v2833_v20 = vpop.f32.mrf.mxu0 }
 0x17b   :  { %2099 = vst.msk [vmem:[%s5271_s8 + $0x88] sm:$0xff] %vm39_vm3, %v2050_v52  ;;  %v1806_v61 = vadd.f32 %v1757_v51, %v1708_v63  ;;  %v2002_v59 = vsub.f32 %v1953_v7, %v1021_v2  ;;  %v1710_v2 = vld [vmem:[%s5269_s7 + $0xa8] sm:$0xff] }
 0x17c   :  { %v1031_v15 = vpop.f32.mrf.mxu1  ;;  %v1540_v58 = vpop.f32.mrf.mxu0  ;;  %v1907_v52 = vld [vmem:[%s5271_s8 + $0xa8] sm:$0xff] }
 0x17d   :  { %1856 = vst.msk [vmem:[%s5269_s7 + $0x98] sm:$0xff] %vm39_vm3, %v1806_v61  ;;  %v2051_v23 = vadd.f32 %v2002_v59, %v1904_v12  ;;  %v1758_v40 = vsub.f32 %v4416_v45, %v1031_v15  ;;  %v1954_v47 = vsub.f32 %v1540_v58, %v4402_v34  ;;  %v1712_v61 = vld [vmem:[%s5269_s7 + $0xb8] sm:$0xff]  ;;  %v1908_v58 = vld [vmem:[%s5271_s8 + $0xb0] sm:$0xff] }
 0x17e   :  { %v2682_v36 = vpop.f32.mrf.mxu1  ;;  %v2836_v5 = vpop.f32.mrf.mxu0 }
 0x17f   :  { %2100 = vst.msk [vmem:[%s5271_s8 + $0x90] sm:$0xff] %vm39_vm3, %v2051_v23  ;;  %v1807_v8 = vadd.f32 %v1758_v40, %v1709_v4  ;;  %v2003_v6 = vsub.f32 %v1954_v47, %v1026_v13  ;;  %v1713_v5 = vld [vmem:[%s5269_s7 + $0xc0] sm:$0xff] }
 0x180   :  { %v1036_v18 = vpop.f32.mrf.mxu1  ;;  %v1545_v26 = vpop.f32.mrf.mxu0 }
 0x181   :  { %1857 = vst.msk [vmem:[%s5269_s7 + $0xa0] sm:$0xff] %vm39_vm3, %v1807_v8  ;;  %v2052_v34 = vadd.f32 %v2003_v6, %v1905_v3  ;;  %v1759_v54 = vsub.f32 %v4430_v37, %v1036_v18  ;;  %v1955_v35 = vsub.f32 %v1545_v26, %v4416_v45 }
 0x182   :  { %v2685_v57 = vpop.f32.mrf.mxu1  ;;  %v2839_v31 = vpop.f32.mrf.mxu0 }
 0x183   :  { %2101 = vst.msk [vmem:[%s5271_s8 + $0x98] sm:$0xff] %vm39_vm3, %v2052_v34  ;;  %v1808_v0 = vadd.f32 %v1759_v54, %v1710_v2  ;;  %v2004_v27 = vsub.f32 %v1955_v35, %v1031_v15  ;;  %v1909_v2 = vld [vmem:[%s5271_s8 + $0xb8] sm:$0xff]  ;;  %v1714_v57 = vld [vmem:[%s5269_s7 + $0xc8] sm:$0xff] }
 0x184   :  { %v1041_v48 = vpop.f32.mrf.mxu1  ;;  %v1550_v13 = vpop.f32.mrf.mxu0 }
 0x185   :  { %1858 = vst.msk [vmem:[%s5269_s7 + $0xa8] sm:$0xff] %vm39_vm3, %v1808_v0  ;;  %v2053_v45 = vadd.f32 %v2004_v27, %v1906_v39  ;;  %v1760_v63 = vsub.f32 %v4444_v41, %v1041_v48  ;;  %v1956_v29 = vsub.f32 %v1550_v13, %v4430_v37 }
 0x186   :  { %v2688_v51 = vpop.f32.mrf.mxu1  ;;  %v2842_v7 = vpop.f32.mrf.mxu0 }
 0x187   :  { %2102 = vst.msk [vmem:[%s5271_s8 + $0xa0] sm:$0xff] %vm39_vm3, %v2053_v45  ;;  %v1809_v12 = vadd.f32 %v1760_v63, %v1711_v49  ;;  %v2005_v19 = vsub.f32 %v1956_v29, %v1036_v18 }
 0x188   :  { %v1046_v20 = vpop.f32.mrf.mxu1  ;;  %v1555_v59 = vpop.f32.mrf.mxu0 }
 0x189   :  { %1859 = vst.msk [vmem:[%s5269_s7 + $0xb0] sm:$0xff] %vm39_vm3, %v1809_v12  ;;  %v2054_v37 = vadd.f32 %v2005_v19, %v1907_v52  ;;  %v1761_v15 = vsub.f32 %v4458_v10, %v1046_v20  ;;  %v1957_v4 = vsub.f32 %v1555_v59, %v4444_v41  ;;  %v1715_v52 = vld [vmem:[%s5269_s7 + $0xd0] sm:$0xff]  ;;  %v1911_v19 = vld [vmem:[%s5271_s8 + $0xc8] sm:$0xff] }
 0x18a   :  { %v2691_v23 = vpop.f32.mrf.mxu1  ;;  %v2845_v40 = vpop.f32.mrf.mxu0 }
 0x18b   :  { %2103 = vst.msk [vmem:[%s5271_s8 + $0xa8] sm:$0xff] %vm39_vm3, %v2054_v37  ;;  %v1810_v47 = vadd.f32 %v1761_v15, %v1712_v61  ;;  %v2006_v3 = vsub.f32 %v1957_v4, %v1041_v48  ;;  %v1910_v48 = vld [vmem:[%s5271_s8 + $0xc0] sm:$0xff]  ;;  %v1716_v4 = vld [vmem:[%s5269_s7 + $0xd8] sm:$0xff] }
 0x18c   :  { %v1051_v36 = vpop.f32.mrf.mxu1  ;;  %v1560_v8 = vpop.f32.mrf.mxu0 }
 0x18d   :  { %1860 = vst.msk [vmem:[%s5269_s7 + $0xb8] sm:$0xff] %vm39_vm3, %v1810_v47  ;;  %v2055_v41 = vadd.f32 %v2006_v3, %v1908_v58  ;;  %v1762_v6 = vsub.f32 %v4472_v55, %v1051_v36  ;;  %v1958_v18 = vsub.f32 %v1560_v8, %v4458_v10  ;;  %v1912_v47 = vld [vmem:[%s5271_s8 + $0xd0] sm:$0xff] }
 0x18e   :  { %v2694_v26 = vpop.f32.mrf.mxu1  ;;  %v2848_v34 = vpop.f32.mrf.mxu0 }
 0x18f   :  { %2104 = vst.msk [vmem:[%s5271_s8 + $0xb0] sm:$0xff] %vm39_vm3, %v2055_v41  ;;  %v1811_v54 = vadd.f32 %v1762_v6, %v1713_v5  ;;  %v2007_v35 = vsub.f32 %v1958_v18, %v1046_v20  ;;  %v1717_v6 = vld [vmem:[%s5269_s7 + $0xe0] sm:$0xff]  ;;  %v1913_v34 = vld [vmem:[%s5271_s8 + $0xd8] sm:$0xff] }
 0x190   :  { %v1056_v39 = vpop.f32.mrf.mxu1  ;;  %v1565_v31 = vpop.f32.mrf.mxu0 }
 0x191   :  { %1861 = vst.msk [vmem:[%s5269_s7 + $0xc0] sm:$0xff] %vm39_vm3, %v1811_v54  ;;  %v2056_v10 = vadd.f32 %v2007_v35, %v1909_v2  ;;  %v1763_v0 = vsub.f32 %v4137_v21, %v1056_v39  ;;  %v1959_v27 = vsub.f32 %v1565_v31, %v4472_v55 }
 0x192   :  { %v2697_v49 = vpop.f32.mrf.mxu1  ;;  %v2851_v13 = vpop.f32.mrf.mxu0 }
 0x193   :  { %2105 = vst.msk [vmem:[%s5271_s8 + $0xb8] sm:$0xff] %vm39_vm3, %v2056_v10  ;;  %v1812_v45 = vadd.f32 %v1763_v0, %v1714_v57  ;;  %v2008_v63 = vsub.f32 %v1959_v27, %v1051_v36  ;;  %v1718_v10 = vld [vmem:[%s5269_s7 + $0xe8] sm:$0xff]  ;;  %v1914_v49 = vld [vmem:[%s5271_s8 + $0xe0] sm:$0xff] }
 0x194   :  { %v1061_v29 = vpop.f32.mrf.mxu1  ;;  %v1570_v51 = vpop.f32.mrf.mxu0 }
 0x195   :  { %1862 = vst.msk [vmem:[%s5269_s7 + $0xc8] sm:$0xff] %vm39_vm3, %v1812_v45  ;;  %v2057_v55 = vadd.f32 %v2008_v63, %v1910_v48  ;;  %v1764_v7 = vsub.f32 %v4151_v28, %v1061_v29  ;;  %v1960_v12 = vsub.f32 %v1570_v51, %v4137_v21  ;;  %v1719_v51 = vld [vmem:[%s5269_s7 + $0xf0] sm:$0xff] }
 0x196   :  { %v2700_v20 = vpop.f32.mrf.mxu1  ;;  %v2854_v61 = vpop.f32.mrf.mxu0 }
 0x197   :  { %2106 = vst.msk [vmem:[%s5271_s8 + $0xc0] sm:$0xff] %vm39_vm3, %v2057_v55  ;;  %v1813_v59 = vadd.f32 %v1764_v7, %v1715_v52  ;;  %v2009_v37 = vsub.f32 %v1960_v12, %v1056_v39 }
 0x198   :  { %v1066_v15 = vpop.f32.mrf.mxu1  ;;  %v1575_v58 = vpop.f32.mrf.mxu0 }
 0x199   :  { %1863 = vst.msk [vmem:[%s5269_s7 + $0xd0] sm:$0xff] %vm39_vm3, %v1813_v59  ;;  %v2058_v21 = vadd.f32 %v2009_v37, %v1911_v19  ;;  %v1765_v23 = vsub.f32 %v4165_v1, %v1066_v15  ;;  %v1961_v40 = vsub.f32 %v1575_v58, %v4151_v28  ;;  %v1915_v19 = vld [vmem:[%s5271_s8 + $0xe8] sm:$0xff] }
 0x19a   :  { %v2703_v3 = vpop.f32.mrf.mxu1  ;;  %v2857_v36 = vpop.f32.mrf.mxu0 }
 0x19b   :  { %2107 = vst.msk [vmem:[%s5271_s8 + $0xc8] sm:$0xff] %vm39_vm3, %v2058_v21  ;;  %v1814_v5 = vadd.f32 %v1765_v23, %v1716_v4  ;;  %v2010_v8 = vsub.f32 %v1961_v40, %v1061_v29  ;;  %v1720_v4 = vld [vmem:[%s5269_s7 + $0xf8] sm:$0xff]  ;;  %v1916_v40 = vld [vmem:[%s5271_s8 + $0xf0] sm:$0xff] }
 0x19c   :  { %v1071_v41 = vpop.f32.mrf.mxu1  ;;  %v1580_v18 = vpop.f32.mrf.mxu0 }
 0x19d   :  { %1864 = vst.msk [vmem:[%s5269_s7 + $0xd8] sm:$0xff] %vm39_vm3, %v1814_v5  ;;  %v2059_v28 = vadd.f32 %v2010_v8, %v1912_v47  ;;  %v1766_v2 = vsub.f32 %v4179_v42, %v1071_v41  ;;  %v1962_v26 = vsub.f32 %v1580_v18, %v4165_v1 }
 0x19e   :  { %v2706_v54 = vpop.f32.mrf.mxu1  ;;  %v2860_v35 = vpop.f32.mrf.mxu0 }
 0x19f   :  { %2108 = vst.msk [vmem:[%s5271_s8 + $0xd0] sm:$0xff] %vm39_vm3, %v2059_v28  ;;  %v1815_v39 = vadd.f32 %v1766_v2, %v1717_v6  ;;  %v2011_v57 = vsub.f32 %v1962_v26, %v1066_v15  ;;  %v1917_v2 = vld [vmem:[%s5271_s8 + $0xf8] sm:$0xff] }
 0x1a0   :  { %v1076_v31 = vpop.f32.mrf.mxu1  ;;  %v1585_v0 = vpop.f32.mrf.mxu0 }
 0x1a1   :  { %1865 = vst.msk [vmem:[%s5269_s7 + $0xe0] sm:$0xff] %vm39_vm3, %v1815_v39  ;;  %v2060_v1 = vadd.f32 %v2011_v57, %v1913_v34  ;;  %v1767_v27 = vsub.f32 %v4193_v46, %v1076_v31  ;;  %v1963_v48 = vsub.f32 %v1585_v0, %v4179_v42  ;;  %v1722_v57 = vld [vmem:[%s5269_s7 + $0x108] sm:$0xff] }
 0x1a2   :  { %v2709_v13 = vpop.f32.mrf.mxu1  ;;  %v2863_v45 = vpop.f32.mrf.mxu0 }
 0x1a3   :  { %2109 = vst.msk [vmem:[%s5271_s8 + $0xd8] sm:$0xff] %vm39_vm3, %v2060_v1  ;;  %v1816_v63 = vadd.f32 %v1767_v27, %v1718_v10  ;;  %v2012_v29 = vsub.f32 %v1963_v48, %v1071_v41  ;;  %v1721_v41 = vld [vmem:[%s5269_s7 + $0x100] sm:$0xff] }
 0x1a4   :  { %v1081_v52 = vpop.f32.mrf.mxu1  ;;  %v1590_v55 = vpop.f32.mrf.mxu0  ;;  %v1918_v1 = vld [vmem:[%s5271_s8 + $0x100] sm:$0xff] }
 0x1a5   :  { %1866 = vst.msk [vmem:[%s5269_s7 + $0xe8] sm:$0xff] %vm39_vm3, %v1816_v63  ;;  %v2061_v42 = vadd.f32 %v2012_v29, %v1914_v49  ;;  %v1768_v7 = vsub.f32 %v4207_v50, %v1081_v52  ;;  %v1964_v12 = vsub.f32 %v1590_v55, %v4193_v46  ;;  %v1723_v63 = vld [vmem:[%s5269_s7 + $0x110] sm:$0xff]  ;;  %v1919_v55 = vld [vmem:[%s5271_s8 + $0x108] sm:$0xff] }
 0x1a6   :  { %v2712_v20 = vpop.f32.mrf.mxu1  ;;  %v2866_v61 = vpop.f32.mrf.mxu0 }
 0x1a7   :  { %2110 = vst.msk [vmem:[%s5271_s8 + $0xe0] sm:$0xff] %vm39_vm3, %v2061_v42  ;;  %v1817_v59 = vadd.f32 %v1768_v7, %v1719_v51  ;;  %v2013_v37 = vsub.f32 %v1964_v12, %v1076_v31  ;;  %v1724_v61 = vld [vmem:[%s5269_s7 + $0x118] sm:$0xff] }
 0x1a8   :  { %v1086_v15 = vpop.f32.mrf.mxu1  ;;  %v1595_v58 = vpop.f32.mrf.mxu0 }
 0x1a9   :  { %1867 = vst.msk [vmem:[%s5269_s7 + $0xf0] sm:$0xff] %vm39_vm3, %v1817_v59  ;;  %v2062_v46 = vadd.f32 %v2013_v37, %v1915_v19  ;;  %v1769_v21 = vsub.f32 %v4221_v16, %v1086_v15  ;;  %v1965_v23 = vsub.f32 %v1595_v58, %v4207_v50 }
 0x1aa   :  { %v2715_v47 = vpop.f32.mrf.mxu1  ;;  %v2869_v3 = vpop.f32.mrf.mxu0 }
 0x1ab   :  { %2111 = vst.msk [vmem:[%s5271_s8 + $0xe8] sm:$0xff] %vm39_vm3, %v2062_v46  ;;  %v1818_v36 = vadd.f32 %v1769_v21, %v1720_v4  ;;  %v2014_v5 = vsub.f32 %v1965_v23, %v1081_v52  ;;  %v1920_v4 = vld [vmem:[%s5271_s8 + $0x110] sm:$0xff]  ;;  %v1725_v47 = vld [vmem:[%s5269_s7 + $0x120] sm:$0xff] }
 0x1ac   :  { %v1091_v8 = vpop.f32.mrf.mxu1  ;;  %v1600_v6 = vpop.f32.mrf.mxu0 }
 0x1ad   :  { %1868 = vst.msk [vmem:[%s5269_s7 + $0xf8] sm:$0xff] %vm39_vm3, %v1818_v36  ;;  %v2063_v50 = vadd.f32 %v2014_v5, %v1916_v40  ;;  %v1770_v18 = vsub.f32 %v4235_v60, %v1091_v8  ;;  %v1966_v28 = vsub.f32 %v1600_v6, %v4221_v16 }
 0x1ae   :  { %v2718_v26 = vpop.f32.mrf.mxu1  ;;  %v2872_v34 = vpop.f32.mrf.mxu0 }
 0x1af   :  { %2112 = vst.msk [vmem:[%s5271_s8 + $0xf0] sm:$0xff] %vm39_vm3, %v2063_v50  ;;  %v1819_v54 = vadd.f32 %v1770_v18, %v1721_v41  ;;  %v2015_v35 = vsub.f32 %v1966_v28, %v1086_v15 }
 0x1b0   :  { %v1096_v39 = vpop.f32.mrf.mxu1  ;;  %v1605_v31 = vpop.f32.mrf.mxu0 }
 0x1b1   :  { %1869 = vst.msk [vmem:[%s5269_s7 + $0x100] sm:$0xff] %vm39_vm3, %v1819_v54  ;;  %v2064_v16 = vadd.f32 %v2015_v35, %v1917_v2  ;;  %v1771_v10 = vsub.f32 %v4250_v30, %v1096_v39  ;;  %v1967_v0 = vsub.f32 %v1605_v31, %v4235_v60  ;;  %v1726_v2 = vld [vmem:[%s5269_s7 + $0x128] sm:$0xff]  ;;  %v1922_v35 = vld [vmem:[%s5271_s8 + $0x120] sm:$0xff] }
 0x1b2   :  { %v2721_v27 = vpop.f32.mrf.mxu1  ;;  %v2875_v48 = vpop.f32.mrf.mxu0 }
 0x1b3   :  { %2113 = vst.msk [vmem:[%s5271_s8 + $0xf8] sm:$0xff] %vm39_vm3, %v2064_v16  ;;  %v1820_v49 = vadd.f32 %v1771_v10, %v1722_v57  ;;  %v2016_v13 = vsub.f32 %v1967_v0, %v1091_v8  ;;  %v1921_v8 = vld [vmem:[%s5271_s8 + $0x118] sm:$0xff]  ;;  %v1727_v0 = vld [vmem:[%s5269_s7 + $0x130] sm:$0xff] }
 0x1b4   :  { %v1101_v45 = vpop.f32.mrf.mxu1  ;;  %v1610_v29 = vpop.f32.mrf.mxu0 }
 0x1b5   :  { %1870 = vst.msk [vmem:[%s5269_s7 + $0x108] sm:$0xff] %vm39_vm3, %v1820_v49  ;;  %v2065_v60 = vadd.f32 %v2016_v13, %v1918_v1  ;;  %v1772_v52 = vsub.f32 %v4264_v38, %v1101_v45  ;;  %v1968_v51 = vsub.f32 %v1610_v29, %v4250_v30  ;;  %v1923_v49 = vld [vmem:[%s5271_s8 + $0x128] sm:$0xff] }
 0x1b6   :  { %v2724_v42 = vpop.f32.mrf.mxu1  ;;  %v2878_v7 = vpop.f32.mrf.mxu0 }
 0x1b7   :  { %2114 = vst.msk [vmem:[%s5271_s8 + $0x100] sm:$0xff] %vm39_vm3, %v2065_v60  ;;  %v1821_v12 = vadd.f32 %v1772_v52, %v1723_v63  ;;  %v2017_v19 = vsub.f32 %v1968_v51, %v1096_v39  ;;  %v1728_v52 = vld [vmem:[%s5269_s7 + $0x138] sm:$0xff]  ;;  %v1924_v7 = vld [vmem:[%s5271_s8 + $0x130] sm:$0xff] }
 0x1b8   :  { %v1106_v20 = vpop.f32.mrf.mxu1  ;;  %v1615_v59 = vpop.f32.mrf.mxu0 }
 0x1b9   :  { %1871 = vst.msk [vmem:[%s5269_s7 + $0x110] sm:$0xff] %vm39_vm3, %v1821_v12  ;;  %v2066_v30 = vadd.f32 %v2017_v19, %v1919_v55  ;;  %v1773_v37 = vsub.f32 %v4278_v44, %v1106_v20  ;;  %v1969_v15 = vsub.f32 %v1615_v59, %v4264_v38 }
 0x1ba   :  { %v2727_v58 = vpop.f32.mrf.mxu1  ;;  %v2881_v46 = vpop.f32.mrf.mxu0 }
 0x1bb   :  { %2115 = vst.msk [vmem:[%s5271_s8 + $0x108] sm:$0xff] %vm39_vm3, %v2066_v30  ;;  %v1822_v21 = vadd.f32 %v1773_v37, %v1724_v61  ;;  %v2018_v23 = vsub.f32 %v1969_v15, %v1101_v45  ;;  %v1729_v30 = vld [vmem:[%s5269_s7 + $0x140] sm:$0xff]  ;;  %v1925_v58 = vld [vmem:[%s5271_s8 + $0x138] sm:$0xff] }
 0x1bc   :  { %v1111_v40 = vpop.f32.mrf.mxu1  ;;  %v1620_v3 = vpop.f32.mrf.mxu0 }
 0x1bd   :  { %1872 = vst.msk [vmem:[%s5269_s7 + $0x118] sm:$0xff] %vm39_vm3, %v1822_v21  ;;  %v2067_v38 = vadd.f32 %v2018_v23, %v1920_v4  ;;  %v1774_v36 = vsub.f32 %v4292_v11, %v1111_v40  ;;  %v1970_v5 = vsub.f32 %v1620_v3, %v4278_v44  ;;  %v1730_v3 = vld [vmem:[%s5269_s7 + $0x148] sm:$0xff] }
 0x1be   :  { %v2730_v41 = vpop.f32.mrf.mxu1  ;;  %v2884_v6 = vpop.f32.mrf.mxu0 }
 0x1bf   :  { %2116 = vst.msk [vmem:[%s5271_s8 + $0x110] sm:$0xff] %vm39_vm3, %v2067_v38  ;;  %v1823_v50 = vadd.f32 %v1774_v36, %v1725_v47  ;;  %v2019_v18 = vsub.f32 %v1970_v5, %v1106_v20 }
 0x1c0   :  { %v1116_v28 = vpop.f32.mrf.mxu1  ;;  %v1625_v26 = vpop.f32.mrf.mxu0 }
 0x1c1   :  { %1873 = vst.msk [vmem:[%s5269_s7 + $0x120] sm:$0xff] %vm39_vm3, %v1823_v50  ;;  %v2068_v44 = vadd.f32 %v2019_v18, %v1921_v8  ;;  %v1775_v34 = vsub.f32 %v4306_v22, %v1116_v28  ;;  %v1971_v54 = vsub.f32 %v1625_v26, %v4292_v11  ;;  %v1926_v8 = vld [vmem:[%s5271_s8 + $0x140] sm:$0xff] }
 0x1c2   :  { %v2733_v39 = vpop.f32.mrf.mxu1  ;;  %v2887_v57 = vpop.f32.mrf.mxu0 }
 0x1c3   :  { %2117 = vst.msk [vmem:[%s5271_s8 + $0x118] sm:$0xff] %vm39_vm3, %v2068_v44  ;;  %v1824_v31 = vadd.f32 %v1775_v34, %v1726_v2  ;;  %v2020_v16 = vsub.f32 %v1971_v54, %v1111_v40  ;;  %v1731_v2 = vld [vmem:[%s5269_s7 + $0x150] sm:$0xff]  ;;  %v1927_v54 = vld [vmem:[%s5271_s8 + $0x148] sm:$0xff] }
 0x1c4   :  { %v1121_v10 = vpop.f32.mrf.mxu1  ;;  %v1630_v1 = vpop.f32.mrf.mxu0 }
 0x1c5   :  { %1874 = vst.msk [vmem:[%s5269_s7 + $0x128] sm:$0xff] %vm39_vm3, %v1824_v31  ;;  %v2069_v11 = vadd.f32 %v2020_v16, %v1922_v35  ;;  %v1776_v27 = vsub.f32 %v4320_v62, %v1121_v10  ;;  %v1972_v48 = vsub.f32 %v1630_v1, %v4306_v22 }
 0x1c6   :  { %v2736_v13 = vpop.f32.mrf.mxu1  ;;  %v2890_v45 = vpop.f32.mrf.mxu0 }
 0x1c7   :  { %2118 = vst.msk [vmem:[%s5271_s8 + $0x120] sm:$0xff] %vm39_vm3, %v2069_v11  ;;  %v1825_v63 = vadd.f32 %v1776_v27, %v1727_v0  ;;  %v2021_v29 = vsub.f32 %v1972_v48, %v1116_v28  ;;  %v1928_v27 = vld [vmem:[%s5271_s8 + $0x150] sm:$0xff] }
 0x1c8   :  { %v1126_v60 = vpop.f32.mrf.mxu1  ;;  %v1635_v51 = vpop.f32.mrf.mxu0 }
 0x1c9   :  { %1875 = vst.msk [vmem:[%s5269_s7 + $0x130] sm:$0xff] %vm39_vm3, %v1825_v63  ;;  %v2070_v22 = vadd.f32 %v2021_v29, %v1923_v49  ;;  %v1777_v55 = vsub.f32 %v4334_v32, %v1126_v60  ;;  %v1973_v42 = vsub.f32 %v1635_v51, %v4320_v62  ;;  %v1733_v29 = vld [vmem:[%s5269_s7 + $0x160] sm:$0xff] }
 0x1ca   :  { %v2739_v12 = vpop.f32.mrf.mxu1  ;;  %v2893_v19 = vpop.f32.mrf.mxu0 }
 0x1cb   :  { %2119 = vst.msk [vmem:[%s5271_s8 + $0x128] sm:$0xff] %vm39_vm3, %v2070_v22  ;;  %v1826_v20 = vadd.f32 %v1777_v55, %v1728_v52  ;;  %v2022_v61 = vsub.f32 %v1973_v42, %v1121_v10  ;;  %v1732_v10 = vld [vmem:[%s5269_s7 + $0x158] sm:$0xff] }
 0x1cc   :  { %v1131_v59 = vpop.f32.mrf.mxu1  ;;  %v1640_v37 = vpop.f32.mrf.mxu0  ;;  %v1929_v22 = vld [vmem:[%s5271_s8 + $0x158] sm:$0xff] }
 0x1cd   :  { %1876 = vst.msk [vmem:[%s5269_s7 + $0x138] sm:$0xff] %vm39_vm3, %v1826_v20  ;;  %v2071_v62 = vadd.f32 %v2022_v61, %v1924_v7  ;;  %v1778_v15 = vsub.f32 %v4348_v33, %v1131_v59  ;;  %v1974_v4 = vsub.f32 %v1640_v37, %v4334_v32  ;;  %v1734_v20 = vld [vmem:[%s5269_s7 + $0x168] sm:$0xff]  ;;  %v1930_v37 = vld [vmem:[%s5271_s8 + $0x160] sm:$0xff] }
 0x1ce   :  { %v2742_v46 = vpop.f32.mrf.mxu1  ;;  %v2896_v21 = vpop.f32.mrf.mxu0 }
 0x1cf   :  { %2120 = vst.msk [vmem:[%s5271_s8 + $0x130] sm:$0xff] %vm39_vm3, %v2071_v62  ;;  %v1827_v23 = vadd.f32 %v1778_v15, %v1729_v30  ;;  %v2023_v40 = vsub.f32 %v1974_v4, %v1126_v60  ;;  %v1735_v21 = vld [vmem:[%s5269_s7 + $0x170] sm:$0xff] }
 0x1d0   :  { %v1136_v47 = vpop.f32.mrf.mxu1  ;;  %v1645_v38 = vpop.f32.mrf.mxu0 }
 0x1d1   :  { %1877 = vst.msk [vmem:[%s5269_s7 + $0x140] sm:$0xff] %vm39_vm3, %v1827_v23  ;;  %v2072_v32 = vadd.f32 %v2023_v40, %v1925_v58  ;;  %v1779_v36 = vsub.f32 %v4362_v9, %v1136_v47  ;;  %v1975_v5 = vsub.f32 %v1645_v38, %v4348_v33 }
 0x1d2   :  { %v2745_v41 = vpop.f32.mrf.mxu1  ;;  %v2899_v6 = vpop.f32.mrf.mxu0 }
 0x1d3   :  { %2121 = vst.msk [vmem:[%s5271_s8 + $0x138] sm:$0xff] %vm39_vm3, %v2072_v32  ;;  %v1828_v50 = vadd.f32 %v1779_v36, %v1730_v3  ;;  %v2024_v18 = vsub.f32 %v1975_v5, %v1131_v59  ;;  %v1931_v3 = vld [vmem:[%s5271_s8 + $0x168] sm:$0xff]  ;;  %v1736_v41 = vld [vmem:[%s5269_s7 + $0x178] sm:$0xff] }
 0x1d4   :  { %v1141_v28 = vpop.f32.mrf.mxu1  ;;  %v1650_v26 = vpop.f32.mrf.mxu0 }
 0x1d5   :  { %1878 = vst.msk [vmem:[%s5269_s7 + $0x148] sm:$0xff] %vm39_vm3, %v1828_v50  ;;  %v2073_v33 = vadd.f32 %v2024_v18, %v1926_v8  ;;  %v1780_v44 = vsub.f32 %v4376_v56, %v1141_v28  ;;  %v1976_v34 = vsub.f32 %v1650_v26, %v4362_v9 }
 0x1d6   :  { %v2748_v35 = vpop.f32.mrf.mxu1  ;;  %v2902_v39 = vpop.f32.mrf.mxu0 }
 0x1d7   :  { %2122 = vst.msk [vmem:[%s5271_s8 + $0x140] sm:$0xff] %vm39_vm3, %v2073_v33  ;;  %v1829_v57 = vadd.f32 %v1780_v44, %v1731_v2  ;;  %v2025_v31 = vsub.f32 %v1976_v34, %v1136_v47 }
 0x1d8   :  { %v1146_v16 = vpop.f32.mrf.mxu1  ;;  %v1655_v0 = vpop.f32.mrf.mxu0 }
 0x1d9   :  { %1879 = vst.msk [vmem:[%s5269_s7 + $0x150] sm:$0xff] %vm39_vm3, %v1829_v57  ;;  %v2074_v9 = vadd.f32 %v2025_v31, %v1927_v54  ;;  %v1781_v1 = vsub.f32 %v4390_v24, %v1146_v16  ;;  %v1977_v11 = vsub.f32 %v1655_v0, %v4376_v56  ;;  %v1737_v54 = vld [vmem:[%s5269_s7 + $0x180] sm:$0xff]  ;;  %v1933_v31 = vld [vmem:[%s5271_s8 + $0x178] sm:$0xff] }
 0x1da   :  { %v2751_v48 = vpop.f32.mrf.mxu1  ;;  %v2905_v49 = vpop.f32.mrf.mxu0 }
 0x1db   :  { %2123 = vst.msk [vmem:[%s5271_s8 + $0x148] sm:$0xff] %vm39_vm3, %v2074_v9  ;;  %v1830_v13 = vadd.f32 %v1781_v1, %v1732_v10  ;;  %v2026_v45 = vsub.f32 %v1977_v11, %v1141_v28  ;;  %v1932_v28 = vld [vmem:[%s5271_s8 + $0x170] sm:$0xff] }
 0x1dc   :  { %v1151_v63 = vpop.f32.mrf.mxu1  ;;  %v1660_v60 = vpop.f32.mrf.mxu0 }
 0x1dd   :  { %1880 = vst.msk [vmem:[%s5269_s7 + $0x158] sm:$0xff] %vm39_vm3, %v1830_v13  ;;  %v2075_v56 = vadd.f32 %v2026_v45, %v1928_v27  ;;  %v1782_v52 = vsub.f32 %v4404_v43, %v1151_v63  ;;  %v1978_v51 = vsub.f32 %v1660_v60, %v4390_v24  ;;  %v1934_v27 = vld [vmem:[%s5271_s8 + $0x180] sm:$0xff] }
 0x1de   :  { %v2754_v55 = vpop.f32.mrf.mxu1  ;;  %v2908_v42 = vpop.f32.mrf.mxu0 }
 0x1df   :  { %2124 = vst.msk [vmem:[%s5271_s8 + $0x150] sm:$0xff] %vm39_vm3, %v2075_v56  ;;  %v1831_v7 = vadd.f32 %v1782_v52, %v1733_v29  ;;  %v2027_v12 = vsub.f32 %v1978_v51, %v1146_v16 }
 0x1e0   :  { %v1156_v19 = vpop.f32.mrf.mxu1  ;;  %v1665_v61 = vpop.f32.mrf.mxu0 }
 0x1e1   :  { %1881 = vst.msk [vmem:[%s5269_s7 + $0x160] sm:$0xff] %vm39_vm3, %v1831_v7  ;;  %v2076_v24 = vadd.f32 %v2027_v12, %v1929_v22  ;;  %v1783_v59 = vsub.f32 %v4418_v14, %v1156_v19  ;;  %v1979_v30 = vsub.f32 %v1665_v61, %v4404_v43 }
 0x1e2   :  { %v2757_v62 = vpop.f32.mrf.mxu1  ;;  %v2911_v15 = vpop.f32.mrf.mxu0 }
 0x1e3   :  { %2125 = vst.msk [vmem:[%s5271_s8 + $0x158] sm:$0xff] %vm39_vm3, %v2076_v24  ;;  %v1832_v4 = vadd.f32 %v1783_v59, %v1734_v20  ;;  %v2028_v58 = vsub.f32 %v1979_v30, %v1151_v63 }
 0x1e4   :  { %v1161_v46 = vpop.f32.mrf.mxu1  ;;  %v1670_v23 = vpop.f32.mrf.mxu0 }
 0x1e5   :  { %1882 = vst.msk [vmem:[%s5269_s7 + $0x168] sm:$0xff] %vm39_vm3, %v1832_v4  ;;  %v2077_v43 = vadd.f32 %v2028_v58, %v1930_v37  ;;  %v1784_v40 = vsub.f32 %v4432_v17, %v1161_v46  ;;  %v1980_v47 = vsub.f32 %v1670_v23, %v4418_v14 }
 0x1e6   :  { %v2760_v38 = vpop.f32.mrf.mxu1  ;;  %v2914_v32 = vpop.f32.mrf.mxu0 }
 0x1e7   :  { %2126 = vst.msk [vmem:[%s5271_s8 + $0x160] sm:$0xff] %vm39_vm3, %v2077_v43  ;;  %v1833_v36 = vadd.f32 %v1784_v40, %v1735_v21  ;;  %v2029_v5 = vsub.f32 %v1980_v47, %v1156_v19 }
 0x1e8   :  { %v1166_v8 = vpop.f32.mrf.mxu1  ;;  %v1675_v6 = vpop.f32.mrf.mxu0 }
 0x1e9   :  { %1883 = vst.msk [vmem:[%s5269_s7 + $0x170] sm:$0xff] %vm39_vm3, %v1833_v36  ;;  %v2078_v14 = vadd.f32 %v2029_v5, %v1931_v3  ;;  %v1785_v50 = vsub.f32 %v4446_v25, %v1166_v8  ;;  %v1981_v18 = vsub.f32 %v1675_v6, %v4432_v17 }
 0x1ea   :  { %v2763_v2 = vpop.f32.mrf.mxu1  ;;  %v2917_v26 = vpop.f32.mrf.mxu0 }
 0x1eb   :  { %2127 = vst.msk [vmem:[%s5271_s8 + $0x168] sm:$0xff] %vm39_vm3, %v2078_v14  ;;  %v1834_v33 = vadd.f32 %v1785_v50, %v1736_v41  ;;  %v2030_v44 = vsub.f32 %v1981_v18, %v1161_v46 }
 0x1ec   :  { %v1171_v34 = vpop.f32.mrf.mxu1  ;;  %v1680_v35 = vpop.f32.mrf.mxu0 }
 0x1ed   :  { %1884 = vst.msk [vmem:[%s5269_s7 + $0x178] sm:$0xff] %vm39_vm3, %v1834_v33  ;;  %v2079_v17 = vadd.f32 %v2030_v44, %v1932_v28  ;;  %v1786_v39 = vsub.f32 %v4460_v53, %v1171_v34  ;;  %v1982_v57 = vsub.f32 %v1680_v35, %v4446_v25 }
 0x1ee   :  { %v2920_v16 = vpop.f32.mrf.mxu0  ;;  %v2766_v10 = vpop.f32.mrf.mxu1 }
 0x1ef   :  { %2128 = vst.msk [vmem:[%s5271_s8 + $0x170] sm:$0xff] %vm39_vm3, %v2079_v17  ;;  %v1835_v0 = vadd.f32 %v1786_v39, %v1737_v54  ;;  %v2031_v9 = vsub.f32 %v1982_v57, %v1166_v8 }
 0x1f0   :  { %v1685_v1 = vpop.f32.mrf.mxu0 }
 0x1f1   :  { %1885 = vst.msk [vmem:[%s5269_s7 + $0x180] sm:$0xff] %vm39_vm3, %v1835_v0  ;;  %v2080_v25 = vadd.f32 %v2031_v9, %v1933_v31  ;;  %v1983_v11 = vsub.f32 %v1685_v1, %v4460_v53 }
 0x1f2   :  { %v2923_v48 = vpop.f32.mrf.mxu0 }
 0x1f3   :  { %2129 = vst.msk [vmem:[%s5271_s8 + $0x178] sm:$0xff] %vm39_vm3, %v2080_v25  ;;  %v2032_v49 = vsub.f32 %v1983_v11, %v1171_v34 }
 0x1f5   :  { %v2081_v13 = vadd.f32 %v2032_v49, %v1934_v27 }
 0x1f7   :  { %2130 = vst.msk [vmem:[%s5271_s8 + $0x180] sm:$0xff] %vm39_vm3, %v2081_v13 }

</bundles_post_ra>
